<compile_context>
chip_gen: v7x
topology: tpu7x:2x2x1
jax: 0.10.0
libtpu: 0.0.40
codegen_flags: <defaults>
</compile_context>

<pallas_src>
import functools

import jax
import jax.numpy as jnp
from jax import lax
from jax.experimental import pallas as pl
from jax.experimental.pallas import tpu as pltpu


# ----------------------------------------------------------------------------- kernel
def _down_kernel(*refs, H, W, Cin, Cout, has_time):
    if has_time:
        (x_ref, t_ref, wt_ref, bt_ref,
         w1_ref, b1_ref, w2_ref, b2_ref, wd_ref, bd_ref,
         o1_ref, o2_ref) = refs
    else:
        (x_ref,
         w1_ref, b1_ref, w2_ref, b2_ref, wd_ref, bd_ref,
         o1_ref, o2_ref) = refs

    f32 = jnp.float32
    Hh, Wh = H // 2, W // 2

    # ---- input rows, lane-dense (H, W*Cin) ------------------------------------
    x = x_ref[0]
    if has_time:
        # Linear(time_dim -> Cin); weights are pre-tiled to (Td, W*Cin) so the
        # projected embedding lands directly in the lane-dense row layout.
        t_row = jnp.dot(t_ref[0], wt_ref[...],
                        preferred_element_type=f32) + bt_ref[...]   # (1, W*Cin)
        x = x + t_row                                                # broadcast over H

    # ---- H-direction shift/zero-pad as 0/1 selection matrices (stride 1) ------
    ho = lax.broadcasted_iota(jnp.int32, (H, H), 0)   # output row
    hi = lax.broadcasted_iota(jnp.int32, (H, H), 1)   # input row
    shift = [(hi == ho + dy - 1).astype(f32) for dy in range(3)]     # 3 x (H, H)

    def conv3x3(inp, wb_ref, b_ref):
        # inp: (H, W*Cin_in);  wb_ref: (3, W*Cin_in, W*Cout);  b_ref: (1, W*Cout)
        acc = jnp.zeros((H, W * Cout), f32)
        for dy in range(3):
            rows = jnp.dot(shift[dy], inp, preferred_element_type=f32)      # H shift
            acc = acc + jnp.dot(rows, wb_ref[dy],                           # W taps
                                preferred_element_type=f32)
        return acc + b_ref[...]

    h1 = jnp.maximum(conv3x3(x, w1_ref, b1_ref), 0.0)    # (H, W*Cout)
    h2 = jnp.maximum(conv3x3(h1, w2_ref, b2_ref), 0.0)   # (H, W*Cout)

    o1_ref[0] = h2                                        # lane-dense, unmasked store

    # ---- downsample conv: 3x3, stride 2, pad 1 (no activation) ----------------
    do = lax.broadcasted_iota(jnp.int32, (Hh, H), 0)
    di = lax.broadcasted_iota(jnp.int32, (Hh, H), 1)
    accd = jnp.zeros((Hh, Wh * Cout), f32)
    for dy in range(3):
        sel = (di == 2 * do + dy - 1).astype(f32)                           # (Hh, H)
        rows = jnp.dot(sel, h2, preferred_element_type=f32)                 # H stride-2
        accd = accd + jnp.dot(rows, wd_ref[dy],
                              preferred_element_type=f32)
    o2_ref[0] = accd + bd_ref[...]


# ------------------------------------------------------------------- parameter packing
def _banded_conv_weights(w_hwio, w_in, w_out, stride):
    """(3,3,Ci,Co) conv weight -> (3, w_in*Ci, w_out*Co) banded matrices.

    banded[dy][wi*Ci+ci, wo*Co+co] = w[dy, dx, ci, co] with wi = stride*wo + dx - 1,
    zero outside the band -> the W taps and SAME zero-padding become one matmul per dy.
    """
    kh, kw, ci, co = w_hwio.shape
    wi = jnp.arange(w_in)[:, None]
    wo = jnp.arange(w_out)[None, :]
    mats = []
    for dy in range(kh):
        m = jnp.zeros((w_in, ci, w_out, co), w_hwio.dtype)
        for dx in range(kw):
            sel = (wi == stride * wo + (dx - 1)).astype(w_hwio.dtype)
            m = m + sel[:, None, :, None] * w_hwio[dy, dx][None, :, None, :]
        mats.append(m.reshape(w_in * ci, w_out * co))
    return jnp.stack(mats, axis=0)


# ----------------------------------------------------------------------------- wrapper
def down_forward(x_nchw, t_emb, params):
    """Forward of `Down`: returns (x_conv, x_down) in NCHW, like the PyTorch module."""
    wt, bt, w1, b1, w2, b2, wd, bd = params
    B, Cin, H, W = x_nchw.shape
    Cout = w1.shape[-1]
    Td = wt.shape[0]
    assert H % 2 == 0 and W % 2 == 0
    Hh, Wh = H // 2, W // 2
    f32 = jnp.float32

    # NCHW -> NHWC -> lane-dense rows (B, H, W*Cin); free reshape in HBM.
    x_ld = jnp.transpose(x_nchw, (0, 2, 3, 1)).reshape(B, H, W * Cin).astype(f32)

    # One-time parameter layout preprocessing (banded weights, lane-tiled biases).
    w1b = _banded_conv_weights(w1.astype(f32), W, W, 1)     # (3, W*Cin,  W*Cout)
    w2b = _banded_conv_weights(w2.astype(f32), W, W, 1)     # (3, W*Cout, W*Cout)
    wdb = _banded_conv_weights(wd.astype(f32), W, Wh, 2)    # (3, W*Cout, Wh*Cout)
    b1r = jnp.tile(b1.reshape(1, Cout).astype(f32), (1, W))     # (1, W*Cout)
    b2r = jnp.tile(b2.reshape(1, Cout).astype(f32), (1, W))     # (1, W*Cout)
    bdr = jnp.tile(bd.reshape(1, Cout).astype(f32), (1, Wh))    # (1, Wh*Cout)

    has_time = t_emb is not None
    kernel = functools.partial(_down_kernel, H=H, W=W, Cin=Cin, Cout=Cout,
                               has_time=has_time)

    x_spec = pl.BlockSpec((1, H, W * Cin), lambda b: (b, 0, 0))
    weight_specs = [
        pl.BlockSpec((3, W * Cin, W * Cout), lambda b: (0, 0, 0)),
        pl.BlockSpec((1, W * Cout), lambda b: (0, 0)),
        pl.BlockSpec((3, W * Cout, W * Cout), lambda b: (0, 0, 0)),
        pl.BlockSpec((1, W * Cout), lambda b: (0, 0)),
        pl.BlockSpec((3, W * Cout, Wh * Cout), lambda b: (0, 0, 0)),
        pl.BlockSpec((1, Wh * Cout), lambda b: (0, 0)),
    ]

    if has_time:
        t_in = t_emb.reshape(B, 1, Td).astype(f32)
        wt_t = jnp.tile(wt.astype(f32), (1, W))                      # (Td, W*Cin)
        bt_t = jnp.tile(bt.reshape(1, Cin).astype(f32), (1, W))      # (1, W*Cin)
        in_specs = [x_spec,
                    pl.BlockSpec((1, 1, Td), lambda b: (b, 0, 0)),
                    pl.BlockSpec((Td, W * Cin), lambda b: (0, 0)),
                    pl.BlockSpec((1, W * Cin), lambda b: (0, 0))] + weight_specs
        args = (x_ld, t_in, wt_t, bt_t, w1b, b1r, w2b, b2r, wdb, bdr)
    else:
        in_specs = [x_spec] + weight_specs
        args = (x_ld, w1b, b1r, w2b, b2r, wdb, bdr)

    out1, out2 = pl.pallas_call(
        kernel,
        out_shape=(jax.ShapeDtypeStruct((B, H, W * Cout), f32),
                   jax.ShapeDtypeStruct((B, Hh, Wh * Cout), f32)),
        grid_spec=pltpu.PrefetchScalarGridSpec(
            num_scalar_prefetch=0,
            grid=(B,),
            in_specs=in_specs,
            out_specs=[pl.BlockSpec((1, H, W * Cout), lambda b: (b, 0, 0)),
                       pl.BlockSpec((1, Hh, Wh * Cout), lambda b: (b, 0, 0))],
        ),
        compiler_params=pltpu.CompilerParams(
            dimension_semantics=("parallel",)),   # engages both TCs on v7x
    )(*args)

    y = jnp.transpose(out1.reshape(B, H, W, Cout), (0, 3, 1, 2))
    y_down = jnp.transpose(out2.reshape(B, Hh, Wh, Cout), (0, 3, 1, 2))
    return y, y_down


# --------------------------------------------------------------------------- reference
def reference(x_nchw, t_emb, params):
    """Plain-JAX reference identical to the PyTorch `Down.forward`."""
    wt, bt, w1, b1, w2, b2, wd, bd = params
    xh = jnp.transpose(x_nchw, (0, 2, 3, 1))
    if t_emb is not None:
        xh = xh + (t_emb @ wt + bt)[:, None, None, :]

    def dn(lhs, rhs):
        return lax.conv_dimension_numbers(lhs.shape, rhs.shape, ('NHWC', 'HWIO', 'NHWC'))

    h = lax.conv_general_dilated(xh, w1, (1, 1), ((1, 1), (1, 1)),
                                 dimension_numbers=dn(xh, w1))
    h = jnp.maximum(h + b1, 0.0)
    h = lax.conv_general_dilated(h, w2, (1, 1), ((1, 1), (1, 1)),
                                 dimension_numbers=dn(h, w2))
    h = jnp.maximum(h + b2, 0.0)
    hd = lax.conv_general_dilated(h, wd, (2, 2), ((1, 1), (1, 1)),
                                  dimension_numbers=dn(h, wd))
    hd = hd + bd
    return (jnp.transpose(h, (0, 3, 1, 2)), jnp.transpose(hd, (0, 3, 1, 2)))


if __name__ == "__main__":
    B, in_ch, out_ch, time_dim, H, W = 2, 4, 8, 32, 16, 16

    key = jax.random.PRNGKey(0)
    ks = jax.random.split(key, 10)
    wt = jax.random.normal(ks[0], (time_dim, in_ch), jnp.float32) * 0.1     # Linear W^T
    bt = jax.random.normal(ks[1], (1, in_ch), jnp.float32) * 0.1            # Linear bias
    w1 = jax.random.normal(ks[2], (3, 3, in_ch, out_ch), jnp.float32) * 0.1   # conv1 HWIO
    b1 = jax.random.normal(ks[3], (1, out_ch), jnp.float32) * 0.1
    w2 = jax.random.normal(ks[4], (3, 3, out_ch, out_ch), jnp.float32) * 0.1  # conv2 HWIO
    b2 = jax.random.normal(ks[5], (1, out_ch), jnp.float32) * 0.1
    wd = jax.random.normal(ks[6], (3, 3, out_ch, out_ch), jnp.float32) * 0.1  # down HWIO
    bd = jax.random.normal(ks[7], (1, out_ch), jnp.float32) * 0.1
    params = (wt, bt, w1, b1, w2, b2, wd, bd)

    x = jax.random.normal(ks[8], (B, in_ch, H, W), jnp.float32)
    t_emb = jax.random.normal(ks[9], (B, time_dim), jnp.float32)

    y, y_down = down_forward(x, t_emb, params)
    y = jax.block_until_ready(y)
    y_down = jax.block_until_ready(y_down)

    ry, ry_down = reference(x, t_emb, params)
    assert y.shape == (B, out_ch, H, W)
    assert y_down.shape == (B, out_ch, H // 2, W // 2)
    assert jnp.allclose(y, ry, rtol=1e-4, atol=1e-4), "mismatch vs reference (conv out)"
    assert jnp.allclose(y_down, ry_down, rtol=1e-4, atol=1e-4), "mismatch vs reference (down)"

    # also exercise the t_emb=None compiled variant
    yn, ydn = down_forward(x, None, params)
    jax.block_until_ready(ydn)
    ryn, rydn = reference(x, None, params)
    assert jnp.allclose(yn, ryn, rtol=1e-4, atol=1e-4), "mismatch (t_emb=None, conv out)"
    assert jnp.allclose(ydn, rydn, rtol=1e-4, atol=1e-4), "mismatch (t_emb=None, down)"

    print("KERNEL_OK")
</pallas_src>

<mosaic_0001>
module attributes {stable_mosaic.version = 11 : i64} {
  func.func @_down_kernel(%arg0: i32, %arg1: memref<1x16x64xf32, #tpu.memory_space<vmem>>, %arg2: memref<1x1x32xf32, #tpu.memory_space<vmem>>, %arg3: memref<32x64xf32, #tpu.memory_space<vmem>>, %arg4: memref<1x64xf32, #tpu.memory_space<vmem>>, %arg5: memref<3x64x128xf32, #tpu.memory_space<vmem>>, %arg6: memref<1x128xf32, #tpu.memory_space<vmem>>, %arg7: memref<3x128x128xf32, #tpu.memory_space<vmem>>, %arg8: memref<1x128xf32, #tpu.memory_space<vmem>>, %arg9: memref<3x128x64xf32, #tpu.memory_space<vmem>>, %arg10: memref<1x64xf32, #tpu.memory_space<vmem>>, %arg11: memref<1x16x128xf32, #tpu.memory_space<vmem>>, %arg12: memref<1x8x64xf32, #tpu.memory_space<vmem>>) attributes {dimension_semantics = [#tpu.dimension_semantics<parallel>], iteration_bounds = array<i64: 2>, scalar_prefetch = 0 : i64, scratch_operands = 0 : i64, tpu.core_type = #tpu.core_type<tc>, window_params = [{transform_indices = @transform_0, window_bounds = array<i64: 1, 16, 64>}, {transform_indices = @transform_1, window_bounds = array<i64: 1, 1, 32>}, {pipeline_mode = #tpu.pipeline_mode<synchronous>, transform_indices = @transform_2, window_bounds = array<i64: 32, 64>}, {pipeline_mode = #tpu.pipeline_mode<synchronous>, transform_indices = @transform_3, window_bounds = array<i64: 1, 64>}, {pipeline_mode = #tpu.pipeline_mode<synchronous>, transform_indices = @transform_4, window_bounds = array<i64: 3, 64, 128>}, {pipeline_mode = #tpu.pipeline_mode<synchronous>, transform_indices = @transform_5, window_bounds = array<i64: 1, 128>}, {pipeline_mode = #tpu.pipeline_mode<synchronous>, transform_indices = @transform_6, window_bounds = array<i64: 3, 128, 128>}, {pipeline_mode = #tpu.pipeline_mode<synchronous>, transform_indices = @transform_7, window_bounds = array<i64: 1, 128>}, {pipeline_mode = #tpu.pipeline_mode<synchronous>, transform_indices = @transform_8, window_bounds = array<i64: 3, 128, 64>}, {pipeline_mode = #tpu.pipeline_mode<synchronous>, transform_indices = @transform_9, window_bounds = array<i64: 1, 64>}, {transform_indices = @transform_10, window_bounds = array<i64: 1, 16, 128>}, {transform_indices = @transform_11, window_bounds = array<i64: 1, 8, 64>}]} {
    %c0 = arith.constant 0 : index
    %c0_0 = arith.constant 0 : index
    %c0_1 = arith.constant 0 : index
    %0 = vector.load %arg1[%c0, %c0_0, %c0_1] : memref<1x16x64xf32, #tpu.memory_space<vmem>>, vector<1x16x64xf32>
    %1 = vector.shape_cast %0 : vector<1x16x64xf32> to vector<16x64xf32>
    %c0_2 = arith.constant 0 : index
    %c0_3 = arith.constant 0 : index
    %c0_4 = arith.constant 0 : index
    %2 = vector.load %arg2[%c0_2, %c0_3, %c0_4] : memref<1x1x32xf32, #tpu.memory_space<vmem>>, vector<1x1x32xf32>
    %3 = vector.shape_cast %2 : vector<1x1x32xf32> to vector<1x32xf32>
    %c0_5 = arith.constant 0 : index
    %c0_6 = arith.constant 0 : index
    %4 = vector.load %arg3[%c0_5, %c0_6] : memref<32x64xf32, #tpu.memory_space<vmem>>, vector<32x64xf32>
    %cst = arith.constant dense<0.000000e+00> : vector<1x64xf32>
    %5 = tpu.matmul %3, %4, %cst {dimension_numbers = #tpu.dot_dimension_numbers<[1], [0], [0], [1], [0, 0, 1, 1], [], []>} : vector<1x32xf32>, vector<32x64xf32>, vector<1x64xf32> -> vector<1x64xf32>
    %c0_7 = arith.constant 0 : index
    %c0_8 = arith.constant 0 : index
    %6 = vector.load %arg4[%c0_7, %c0_8] : memref<1x64xf32, #tpu.memory_space<vmem>>, vector<1x64xf32>
    %7 = arith.addf %5, %6 : vector<1x64xf32>
    %8 = vector.broadcast %7 : vector<1x64xf32> to vector<16x64xf32>
    %9 = arith.addf %1, %8 : vector<16x64xf32>
    %10 = tpu.iota {dimensions = array<i32: 0>} : vector<16x16xi32>
    %11 = tpu.iota {dimensions = array<i32: 1>} : vector<16x16xi32>
    %c0_i32 = arith.constant 0 : i32
    %12 = vector.broadcast %c0_i32 : i32 to vector<16x16xi32>
    %13 = arith.addi %10, %12 : vector<16x16xi32>
    %c1_i32 = arith.constant 1 : i32
    %14 = vector.broadcast %c1_i32 : i32 to vector<16x16xi32>
    %15 = arith.subi %13, %14 : vector<16x16xi32>
    %16 = arith.cmpi eq, %11, %15 : vector<16x16xi32>
    %17 = arith.extui %16 : vector<16x16xi1> to vector<16x16xi32>
    %18 = arith.sitofp %17 : vector<16x16xi32> to vector<16x16xf32>
    %c1_i32_9 = arith.constant 1 : i32
    %19 = vector.broadcast %c1_i32_9 : i32 to vector<16x16xi32>
    %20 = arith.addi %10, %19 : vector<16x16xi32>
    %c1_i32_10 = arith.constant 1 : i32
    %21 = vector.broadcast %c1_i32_10 : i32 to vector<16x16xi32>
    %22 = arith.subi %20, %21 : vector<16x16xi32>
    %23 = arith.cmpi eq, %11, %22 : vector<16x16xi32>
    %24 = arith.extui %23 : vector<16x16xi1> to vector<16x16xi32>
    %25 = arith.sitofp %24 : vector<16x16xi32> to vector<16x16xf32>
    %c2_i32 = arith.constant 2 : i32
    %26 = vector.broadcast %c2_i32 : i32 to vector<16x16xi32>
    %27 = arith.addi %10, %26 : vector<16x16xi32>
    %c1_i32_11 = arith.constant 1 : i32
    %28 = vector.broadcast %c1_i32_11 : i32 to vector<16x16xi32>
    %29 = arith.subi %27, %28 : vector<16x16xi32>
    %30 = arith.cmpi eq, %11, %29 : vector<16x16xi32>
    %31 = arith.extui %30 : vector<16x16xi1> to vector<16x16xi32>
    %32 = arith.sitofp %31 : vector<16x16xi32> to vector<16x16xf32>
    %cst_12 = arith.constant 0.000000e+00 : f32
    %33 = vector.broadcast %cst_12 : f32 to vector<16x128xf32>
    %cst_13 = arith.constant dense<0.000000e+00> : vector<16x64xf32>
    %34 = tpu.matmul %18, %9, %cst_13 {dimension_numbers = #tpu.dot_dimension_numbers<[1], [0], [0], [1], [0, 0, 1, 1], [], []>} : vector<16x16xf32>, vector<16x64xf32>, vector<16x64xf32> -> vector<16x64xf32>
    %c0_14 = arith.constant 0 : index
    %c0_15 = arith.constant 0 : index
    %c0_16 = arith.constant 0 : index
    %35 = vector.load %arg5[%c0_14, %c0_15, %c0_16] : memref<3x64x128xf32, #tpu.memory_space<vmem>>, vector<1x64x128xf32>
    %36 = vector.shape_cast %35 : vector<1x64x128xf32> to vector<64x128xf32>
    %cst_17 = arith.constant dense<0.000000e+00> : vector<16x128xf32>
    %37 = tpu.matmul %34, %36, %cst_17 {dimension_numbers = #tpu.dot_dimension_numbers<[1], [0], [0], [1], [0, 0, 1, 1], [], []>} : vector<16x64xf32>, vector<64x128xf32>, vector<16x128xf32> -> vector<16x128xf32>
    %38 = arith.addf %33, %37 : vector<16x128xf32>
    %cst_18 = arith.constant dense<0.000000e+00> : vector<16x64xf32>
    %39 = tpu.matmul %25, %9, %cst_18 {dimension_numbers = #tpu.dot_dimension_numbers<[1], [0], [0], [1], [0, 0, 1, 1], [], []>} : vector<16x16xf32>, vector<16x64xf32>, vector<16x64xf32> -> vector<16x64xf32>
    %c1 = arith.constant 1 : index
    %c0_19 = arith.constant 0 : index
    %c0_20 = arith.constant 0 : index
    %40 = vector.load %arg5[%c1, %c0_19, %c0_20] : memref<3x64x128xf32, #tpu.memory_space<vmem>>, vector<1x64x128xf32>
    %41 = vector.shape_cast %40 : vector<1x64x128xf32> to vector<64x128xf32>
    %cst_21 = arith.constant dense<0.000000e+00> : vector<16x128xf32>
    %42 = tpu.matmul %39, %41, %cst_21 {dimension_numbers = #tpu.dot_dimension_numbers<[1], [0], [0], [1], [0, 0, 1, 1], [], []>} : vector<16x64xf32>, vector<64x128xf32>, vector<16x128xf32> -> vector<16x128xf32>
    %43 = arith.addf %38, %42 : vector<16x128xf32>
    %cst_22 = arith.constant dense<0.000000e+00> : vector<16x64xf32>
    %44 = tpu.matmul %32, %9, %cst_22 {dimension_numbers = #tpu.dot_dimension_numbers<[1], [0], [0], [1], [0, 0, 1, 1], [], []>} : vector<16x16xf32>, vector<16x64xf32>, vector<16x64xf32> -> vector<16x64xf32>
    %c2 = arith.constant 2 : index
    %c0_23 = arith.constant 0 : index
    %c0_24 = arith.constant 0 : index
    %45 = vector.load %arg5[%c2, %c0_23, %c0_24] : memref<3x64x128xf32, #tpu.memory_space<vmem>>, vector<1x64x128xf32>
    %46 = vector.shape_cast %45 : vector<1x64x128xf32> to vector<64x128xf32>
    %cst_25 = arith.constant dense<0.000000e+00> : vector<16x128xf32>
    %47 = tpu.matmul %44, %46, %cst_25 {dimension_numbers = #tpu.dot_dimension_numbers<[1], [0], [0], [1], [0, 0, 1, 1], [], []>} : vector<16x64xf32>, vector<64x128xf32>, vector<16x128xf32> -> vector<16x128xf32>
    %48 = arith.addf %43, %47 : vector<16x128xf32>
    %c0_26 = arith.constant 0 : index
    %c0_27 = arith.constant 0 : index
    %49 = vector.load %arg6[%c0_26, %c0_27] : memref<1x128xf32, #tpu.memory_space<vmem>>, vector<1x128xf32>
    %50 = vector.broadcast %49 : vector<1x128xf32> to vector<16x128xf32>
    %51 = arith.addf %48, %50 : vector<16x128xf32>
    %cst_28 = arith.constant 0.000000e+00 : f32
    %52 = vector.broadcast %cst_28 : f32 to vector<16x128xf32>
    %53 = arith.maximumf %51, %52 : vector<16x128xf32>
    %cst_29 = arith.constant 0.000000e+00 : f32
    %54 = vector.broadcast %cst_29 : f32 to vector<16x128xf32>
    %cst_30 = arith.constant dense<0.000000e+00> : vector<16x128xf32>
    %55 = tpu.matmul %18, %53, %cst_30 {dimension_numbers = #tpu.dot_dimension_numbers<[1], [0], [0], [1], [0, 0, 1, 1], [], []>} : vector<16x16xf32>, vector<16x128xf32>, vector<16x128xf32> -> vector<16x128xf32>
    %c0_31 = arith.constant 0 : index
    %c0_32 = arith.constant 0 : index
    %c0_33 = arith.constant 0 : index
    %56 = vector.load %arg7[%c0_31, %c0_32, %c0_33] : memref<3x128x128xf32, #tpu.memory_space<vmem>>, vector<1x128x128xf32>
    %57 = vector.shape_cast %56 : vector<1x128x128xf32> to vector<128x128xf32>
    %cst_34 = arith.constant dense<0.000000e+00> : vector<16x128xf32>
    %58 = tpu.matmul %55, %57, %cst_34 {dimension_numbers = #tpu.dot_dimension_numbers<[1], [0], [0], [1], [0, 0, 1, 1], [], []>} : vector<16x128xf32>, vector<128x128xf32>, vector<16x128xf32> -> vector<16x128xf32>
    %59 = arith.addf %54, %58 : vector<16x128xf32>
    %cst_35 = arith.constant dense<0.000000e+00> : vector<16x128xf32>
    %60 = tpu.matmul %25, %53, %cst_35 {dimension_numbers = #tpu.dot_dimension_numbers<[1], [0], [0], [1], [0, 0, 1, 1], [], []>} : vector<16x16xf32>, vector<16x128xf32>, vector<16x128xf32> -> vector<16x128xf32>
    %c1_36 = arith.constant 1 : index
    %c0_37 = arith.constant 0 : index
    %c0_38 = arith.constant 0 : index
    %61 = vector.load %arg7[%c1_36, %c0_37, %c0_38] : memref<3x128x128xf32, #tpu.memory_space<vmem>>, vector<1x128x128xf32>
    %62 = vector.shape_cast %61 : vector<1x128x128xf32> to vector<128x128xf32>
    %cst_39 = arith.constant dense<0.000000e+00> : vector<16x128xf32>
    %63 = tpu.matmul %60, %62, %cst_39 {dimension_numbers = #tpu.dot_dimension_numbers<[1], [0], [0], [1], [0, 0, 1, 1], [], []>} : vector<16x128xf32>, vector<128x128xf32>, vector<16x128xf32> -> vector<16x128xf32>
    %64 = arith.addf %59, %63 : vector<16x128xf32>
    %cst_40 = arith.constant dense<0.000000e+00> : vector<16x128xf32>
    %65 = tpu.matmul %32, %53, %cst_40 {dimension_numbers = #tpu.dot_dimension_numbers<[1], [0], [0], [1], [0, 0, 1, 1], [], []>} : vector<16x16xf32>, vector<16x128xf32>, vector<16x128xf32> -> vector<16x128xf32>
    %c2_41 = arith.constant 2 : index
    %c0_42 = arith.constant 0 : index
    %c0_43 = arith.constant 0 : index
    %66 = vector.load %arg7[%c2_41, %c0_42, %c0_43] : memref<3x128x128xf32, #tpu.memory_space<vmem>>, vector<1x128x128xf32>
    %67 = vector.shape_cast %66 : vector<1x128x128xf32> to vector<128x128xf32>
    %cst_44 = arith.constant dense<0.000000e+00> : vector<16x128xf32>
    %68 = tpu.matmul %65, %67, %cst_44 {dimension_numbers = #tpu.dot_dimension_numbers<[1], [0], [0], [1], [0, 0, 1, 1], [], []>} : vector<16x128xf32>, vector<128x128xf32>, vector<16x128xf32> -> vector<16x128xf32>
    %69 = arith.addf %64, %68 : vector<16x128xf32>
    %c0_45 = arith.constant 0 : index
    %c0_46 = arith.constant 0 : index
    %70 = vector.load %arg8[%c0_45, %c0_46] : memref<1x128xf32, #tpu.memory_space<vmem>>, vector<1x128xf32>
    %71 = vector.broadcast %70 : vector<1x128xf32> to vector<16x128xf32>
    %72 = arith.addf %69, %71 : vector<16x128xf32>
    %cst_47 = arith.constant 0.000000e+00 : f32
    %73 = vector.broadcast %cst_47 : f32 to vector<16x128xf32>
    %74 = arith.maximumf %72, %73 : vector<16x128xf32>
    %c0_48 = arith.constant 0 : index
    %c0_49 = arith.constant 0 : index
    %c0_50 = arith.constant 0 : index
    %75 = vector.load %arg11[%c0_48, %c0_49, %c0_50] : memref<1x16x128xf32, #tpu.memory_space<vmem>>, vector<1x16x128xf32>
    %76 = vector.shape_cast %75 : vector<1x16x128xf32> to vector<16x128xf32>
    %77 = vector.shape_cast %74 : vector<16x128xf32> to vector<1x16x128xf32>
    tpu.vector_store %arg11[%c0_48, %c0_49, %c0_50], %77 {strides = array<i32>} : memref<1x16x128xf32, #tpu.memory_space<vmem>>, vector<1x16x128xf32>,
    %78 = tpu.iota {dimensions = array<i32: 0>} : vector<8x16xi32>
    %79 = tpu.iota {dimensions = array<i32: 1>} : vector<8x16xi32>
    %cst_51 = arith.constant 0.000000e+00 : f32
    %80 = vector.broadcast %cst_51 : f32 to vector<8x64xf32>
    %c2_i32_52 = arith.constant 2 : i32
    %81 = vector.broadcast %c2_i32_52 : i32 to vector<8x16xi32>
    %82 = arith.muli %81, %78 : vector<8x16xi32>
    %c0_i32_53 = arith.constant 0 : i32
    %83 = vector.broadcast %c0_i32_53 : i32 to vector<8x16xi32>
    %84 = arith.addi %82, %83 : vector<8x16xi32>
    %c1_i32_54 = arith.constant 1 : i32
    %85 = vector.broadcast %c1_i32_54 : i32 to vector<8x16xi32>
    %86 = arith.subi %84, %85 : vector<8x16xi32>
    %87 = arith.cmpi eq, %79, %86 : vector<8x16xi32>
    %88 = arith.extui %87 : vector<8x16xi1> to vector<8x16xi32>
    %89 = arith.sitofp %88 : vector<8x16xi32> to vector<8x16xf32>
    %cst_55 = arith.constant dense<0.000000e+00> : vector<8x128xf32>
    %90 = tpu.matmul %89, %74, %cst_55 {dimension_numbers = #tpu.dot_dimension_numbers<[1], [0], [0], [1], [0, 0, 1, 1], [], []>} : vector<8x16xf32>, vector<16x128xf32>, vector<8x128xf32> -> vector<8x128xf32>
    %c0_56 = arith.constant 0 : index
    %c0_57 = arith.constant 0 : index
    %c0_58 = arith.constant 0 : index
    %91 = vector.load %arg9[%c0_56, %c0_57, %c0_58] : memref<3x128x64xf32, #tpu.memory_space<vmem>>, vector<1x128x64xf32>
    %92 = vector.shape_cast %91 : vector<1x128x64xf32> to vector<128x64xf32>
    %cst_59 = arith.constant dense<0.000000e+00> : vector<8x64xf32>
    %93 = tpu.matmul %90, %92, %cst_59 {dimension_numbers = #tpu.dot_dimension_numbers<[1], [0], [0], [1], [0, 0, 1, 1], [], []>} : vector<8x128xf32>, vector<128x64xf32>, vector<8x64xf32> -> vector<8x64xf32>
    %94 = arith.addf %80, %93 : vector<8x64xf32>
    %c2_i32_60 = arith.constant 2 : i32
    %95 = vector.broadcast %c2_i32_60 : i32 to vector<8x16xi32>
    %96 = arith.muli %95, %78 : vector<8x16xi32>
    %c1_i32_61 = arith.constant 1 : i32
    %97 = vector.broadcast %c1_i32_61 : i32 to vector<8x16xi32>
    %98 = arith.addi %96, %97 : vector<8x16xi32>
    %c1_i32_62 = arith.constant 1 : i32
    %99 = vector.broadcast %c1_i32_62 : i32 to vector<8x16xi32>
    %100 = arith.subi %98, %99 : vector<8x16xi32>
    %101 = arith.cmpi eq, %79, %100 : vector<8x16xi32>
    %102 = arith.extui %101 : vector<8x16xi1> to vector<8x16xi32>
    %103 = arith.sitofp %102 : vector<8x16xi32> to vector<8x16xf32>
    %cst_63 = arith.constant dense<0.000000e+00> : vector<8x128xf32>
    %104 = tpu.matmul %103, %74, %cst_63 {dimension_numbers = #tpu.dot_dimension_numbers<[1], [0], [0], [1], [0, 0, 1, 1], [], []>} : vector<8x16xf32>, vector<16x128xf32>, vector<8x128xf32> -> vector<8x128xf32>
    %c1_64 = arith.constant 1 : index
    %c0_65 = arith.constant 0 : index
    %c0_66 = arith.constant 0 : index
    %105 = vector.load %arg9[%c1_64, %c0_65, %c0_66] : memref<3x128x64xf32, #tpu.memory_space<vmem>>, vector<1x128x64xf32>
    %106 = vector.shape_cast %105 : vector<1x128x64xf32> to vector<128x64xf32>
    %cst_67 = arith.constant dense<0.000000e+00> : vector<8x64xf32>
    %107 = tpu.matmul %104, %106, %cst_67 {dimension_numbers = #tpu.dot_dimension_numbers<[1], [0], [0], [1], [0, 0, 1, 1], [], []>} : vector<8x128xf32>, vector<128x64xf32>, vector<8x64xf32> -> vector<8x64xf32>
    %108 = arith.addf %94, %107 : vector<8x64xf32>
    %c2_i32_68 = arith.constant 2 : i32
    %109 = vector.broadcast %c2_i32_68 : i32 to vector<8x16xi32>
    %110 = arith.muli %109, %78 : vector<8x16xi32>
    %c2_i32_69 = arith.constant 2 : i32
    %111 = vector.broadcast %c2_i32_69 : i32 to vector<8x16xi32>
    %112 = arith.addi %110, %111 : vector<8x16xi32>
    %c1_i32_70 = arith.constant 1 : i32
    %113 = vector.broadcast %c1_i32_70 : i32 to vector<8x16xi32>
    %114 = arith.subi %112, %113 : vector<8x16xi32>
    %115 = arith.cmpi eq, %79, %114 : vector<8x16xi32>
    %116 = arith.extui %115 : vector<8x16xi1> to vector<8x16xi32>
    %117 = arith.sitofp %116 : vector<8x16xi32> to vector<8x16xf32>
    %cst_71 = arith.constant dense<0.000000e+00> : vector<8x128xf32>
    %118 = tpu.matmul %117, %74, %cst_71 {dimension_numbers = #tpu.dot_dimension_numbers<[1], [0], [0], [1], [0, 0, 1, 1], [], []>} : vector<8x16xf32>, vector<16x128xf32>, vector<8x128xf32> -> vector<8x128xf32>
    %c2_72 = arith.constant 2 : index
    %c0_73 = arith.constant 0 : index
    %c0_74 = arith.constant 0 : index
    %119 = vector.load %arg9[%c2_72, %c0_73, %c0_74] : memref<3x128x64xf32, #tpu.memory_space<vmem>>, vector<1x128x64xf32>
    %120 = vector.shape_cast %119 : vector<1x128x64xf32> to vector<128x64xf32>
    %cst_75 = arith.constant dense<0.000000e+00> : vector<8x64xf32>
    %121 = tpu.matmul %118, %120, %cst_75 {dimension_numbers = #tpu.dot_dimension_numbers<[1], [0], [0], [1], [0, 0, 1, 1], [], []>} : vector<8x128xf32>, vector<128x64xf32>, vector<8x64xf32> -> vector<8x64xf32>
    %122 = arith.addf %108, %121 : vector<8x64xf32>
    %c0_76 = arith.constant 0 : index
    %c0_77 = arith.constant 0 : index
    %123 = vector.load %arg10[%c0_76, %c0_77] : memref<1x64xf32, #tpu.memory_space<vmem>>, vector<1x64xf32>
    %124 = vector.broadcast %123 : vector<1x64xf32> to vector<8x64xf32>
    %125 = arith.addf %122, %124 : vector<8x64xf32>
    %c0_78 = arith.constant 0 : index
    %c0_79 = arith.constant 0 : index
    %c0_80 = arith.constant 0 : index
    %126 = vector.load %arg12[%c0_78, %c0_79, %c0_80] : memref<1x8x64xf32, #tpu.memory_space<vmem>>, vector<1x8x64xf32>
    %127 = vector.shape_cast %126 : vector<1x8x64xf32> to vector<8x64xf32>
    %128 = vector.shape_cast %125 : vector<8x64xf32> to vector<1x8x64xf32>
    tpu.vector_store %arg12[%c0_78, %c0_79, %c0_80], %128 {strides = array<i32>} : memref<1x8x64xf32, #tpu.memory_space<vmem>>, vector<1x8x64xf32>,
    return
  }
  func.func @transform_0(%arg0: i32) -> (i32, i32, i32) {
    %c0_i32 = arith.constant 0 : i32
    %c0_i32_0 = arith.constant 0 : i32
    %c0_i32_1 = arith.constant 0 : i32
    return %arg0, %c0_i32, %c0_i32_0 : i32, i32, i32
  }
  func.func @transform_1(%arg0: i32) -> (i32, i32, i32) {
    %c0_i32 = arith.constant 0 : i32
    %c0_i32_0 = arith.constant 0 : i32
    %c0_i32_1 = arith.constant 0 : i32
    return %arg0, %c0_i32, %c0_i32_0 : i32, i32, i32
  }
  func.func @transform_2(%arg0: i32) -> (i32, i32) {
    %c0_i32 = arith.constant 0 : i32
    %c0_i32_0 = arith.constant 0 : i32
    %c0_i32_1 = arith.constant 0 : i32
    return %c0_i32, %c0_i32_0 : i32, i32
  }
  func.func @transform_3(%arg0: i32) -> (i32, i32) {
    %c0_i32 = arith.constant 0 : i32
    %c0_i32_0 = arith.constant 0 : i32
    %c0_i32_1 = arith.constant 0 : i32
    return %c0_i32, %c0_i32_0 : i32, i32
  }
  func.func @transform_4(%arg0: i32) -> (i32, i32, i32) {
    %c0_i32 = arith.constant 0 : i32
    %c0_i32_0 = arith.constant 0 : i32
    %c0_i32_1 = arith.constant 0 : i32
    %c0_i32_2 = arith.constant 0 : i32
    return %c0_i32, %c0_i32_0, %c0_i32_1 : i32, i32, i32
  }
  func.func @transform_5(%arg0: i32) -> (i32, i32) {
    %c0_i32 = arith.constant 0 : i32
    %c0_i32_0 = arith.constant 0 : i32
    %c0_i32_1 = arith.constant 0 : i32
    return %c0_i32, %c0_i32_0 : i32, i32
  }
  func.func @transform_6(%arg0: i32) -> (i32, i32, i32) {
    %c0_i32 = arith.constant 0 : i32
    %c0_i32_0 = arith.constant 0 : i32
    %c0_i32_1 = arith.constant 0 : i32
    %c0_i32_2 = arith.constant 0 : i32
    return %c0_i32, %c0_i32_0, %c0_i32_1 : i32, i32, i32
  }
  func.func @transform_7(%arg0: i32) -> (i32, i32) {
    %c0_i32 = arith.constant 0 : i32
    %c0_i32_0 = arith.constant 0 : i32
    %c0_i32_1 = arith.constant 0 : i32
    return %c0_i32, %c0_i32_0 : i32, i32
  }
  func.func @transform_8(%arg0: i32) -> (i32, i32, i32) {
    %c0_i32 = arith.constant 0 : i32
    %c0_i32_0 = arith.constant 0 : i32
    %c0_i32_1 = arith.constant 0 : i32
    %c0_i32_2 = arith.constant 0 : i32
    return %c0_i32, %c0_i32_0, %c0_i32_1 : i32, i32, i32
  }
  func.func @transform_9(%arg0: i32) -> (i32, i32) {
    %c0_i32 = arith.constant 0 : i32
    %c0_i32_0 = arith.constant 0 : i32
    %c0_i32_1 = arith.constant 0 : i32
    return %c0_i32, %c0_i32_0 : i32, i32
  }
  func.func @transform_10(%arg0: i32) -> (i32, i32, i32) {
    %c0_i32 = arith.constant 0 : i32
    %c0_i32_0 = arith.constant 0 : i32
    %c0_i32_1 = arith.constant 0 : i32
    return %arg0, %c0_i32, %c0_i32_0 : i32, i32, i32
  }
  func.func @transform_11(%arg0: i32) -> (i32, i32, i32) {
    %c0_i32 = arith.constant 0 : i32
    %c0_i32_0 = arith.constant 0 : i32
    %c0_i32_1 = arith.constant 0 : i32
    return %arg0, %c0_i32, %c0_i32_0 : i32, i32, i32
  }
}

</mosaic_0001>

<bundles_post_ra>
// kernel: tpu_custom_call.1
= control target key start
LH: loop header
LB: loop body
LE: loop exit
PB: predicated region body
PF: predicated region fallthrough
CT: control target
= control target key end

     0   :  { %s4226_s0 = inlined_call_operand.hbm [shape: f32[2,16,64], index: 0, kind: input, shape index: {}]   ;;  %s4227_s1 = inlined_call_operand.vmem [shape: f32[2,1,32], index: 1, kind: input, shape index: {}]   ;;  %s4228_s2 = inlined_call_operand.hbm [shape: f32[32,64], index: 2, kind: input, shape index: {}]   ;;  %s4229_s3 = inlined_call_operand.vmem [shape: f32[1,64], index: 3, kind: input, shape index: {}]   ;;  %s4230_s4 = inlined_call_operand.vmem [shape: f32[3,64,128], index: 4, kind: input, shape index: {}]   ;;  %s4231_s5 = inlined_call_operand.vmem [shape: f32[1,128], index: 5, kind: input, shape index: {}]   ;;  %s4232_s6 = inlined_call_operand.vmem [shape: f32[3,128,128], index: 6, kind: input, shape index: {}]   ;;  %s4233_s7 = inlined_call_operand.vmem [shape: f32[1,128], index: 7, kind: input, shape index: {}]   ;;  %s4234_s8 = inlined_call_operand.vmem [shape: f32[3,128,64], index: 8, kind: input, shape index: {}]   ;;  %s4235_s9 = inlined_call_operand.vmem [shape: f32[1,64], index: 9, kind: input, shape index: {}]   ;;  %s4236_s10 = inlined_call_operand.hbm [shape: f32[2,16,128], index: 10, kind: output, shape index: {0}]   ;;  %s4237_s11 = inlined_call_operand.hbm [shape: f32[2,8,64], index: 11, kind: output, shape index: {1}]  }
   0x1   :  { %4247 = sst [smem:[#allocation17_spill]] %s4237_s11 }
   0x2   :  { %17 = vsyncpa [#allocation3], 0 }
   0x3   :  { %19 = vsyncpa [#allocation3 + $0x1], 0 }
   0x4   :  { %20 = vsyncpa [#allocation6], 0 }
   0x5   :  { %21 = vsyncpa [#allocation4], 0 }
   0x6   :  { %23 = vsyncpa [#allocation4 + $0x1], 0 }
   0x7   :  { %24 = vsyncpa [#allocation9], 0 }
   0x8   :  { %26 = vsyncpa [#allocation9 + $0x1], 0  ;;  %s3482_s17 = smov 0   ;;  %s3484_s18 = smov 0  }
   0x9   :  { %s3486_s19 = smov 0   ;;  %s3488_s20 = smov 0  }
   0xa LB: > { %4248 = sst [smem:[#allocation14_spill]] %s3397_s17  ;;  %s3503_s21 = sadd.s32 4294967295, %s3409_s20   ;;  %s3409_s20 = sphi %s3488_s20, %s4268_s20   ;;  %s3405_s19 = sphi %s3486_s19, %s4271_s19   ;;  %s3401_s18 = sphi %s3484_s18, %s4270_s18   ;;  %s3397_s17 = sphi %s3482_s17, %s4269_s17  }
   0xb   : > { %s2262_s22 = sadd.s32 4294967294, %s3409_s20   ;;  %p52_p0 = scmp.ne.s32.totalorder %s3401_s18, %s3397_s17 }
   0xc   : > { %p4241_p1 = scmp.eq.s32.totalorder %s3503_s21, 0  ;;  %p276_p3 = scmp.eq.s32.totalorder %s2262_s22, 1 }
   0xd   : > { %p2263_p5 = scmp.ge.s32.totalorder %s3409_s20, 1  ;;  %p309_p7 = scmp.lt.s32.totalorder %s3409_s20, 3 }
   0xe   : > { %p3512_p4 = por %p4241_p1, %p52_p0  ;;  %p3517_p6 = por %p276_p3, %p52_p0 }
   0xf   : > { %p3522_p8 = pnand %p2263_p5, %p309_p7  ;;  %s3411_s26 = smov [#allocation5]  }
  0x10   : > { %s4249_s23 = scalar_select %p3512_p4, 1, 0 }
  0x11   : > { %s4250_s24 = scalar_select %p3517_p6, 1, 0 }
  0x12   : > { %s4252_s25 = scalar_select %p3522_p8, 1, 0 }
  0x13   : > { %4251 = sst [smem:[#allocation15_spill]] %s4250_s24  ;;  %s321_s27 = sshll.u32 %s3411_s26, 4  ;;  %s3526_s27 = int_to_ptr.vmem [resolvable:$true] %s321_s27 }
  0x14   : > { %p3190_p9 = pneg %p3522_p8  ;;  %s3538_s29 = sadd.s32 1, %s3409_s20  }
  0x15   : > { %4254 = sst [smem:[#allocation16_spill]] %s3538_s29  ;;  %s39_s30 = sadd.s32 1, %s3405_s19 }
  0x16   : > { %p3533_p11 = pnand %p3190_p9, %p4241_p1  ;;  %s36_s12 = ssub.s32 %s3409_s20, %s3538_s29 }
  0x17   : > { %s3249_s15 = scalar_lea.hbm %s4228_s2, 512 }
  0x18   : > { %p3250_p12 = scmp.ne.s32.totalorder %s4228_s2, %s3249_s15  ;;  %p3251_p13 = pneg %p3533_p11 }
  0x19   : > { %p3256_p5 = scmp.lt.u32.totalorder %s3249_s15, %s4228_s2 }
  0x1a   : > { %p3252_p0 = pnand %p3251_p13, %p3250_p12 }
  0x1c   : > { %p3253_p3 = pneg %p3252_p0 }
  0x1e   : > { %p3258_p7 = pnand %p3256_p5, %p3253_p3 }
  0x20   : > { %3261 = shalt.err (!%p3258_p7)
}
  0x21   : > { %s3262_s29 = scalar_lea.vmem %s3526_s27, 512  ;;  %p3270_p2 = scmp.lt.s32.totalorder %s3526_s27, %s3526_s27 }
  0x22   : > { %p3263_p9 = scmp.ne.s32.totalorder %s3526_s27, %s3262_s29  ;;  %p3271_p6 = scmp.lt.s32.totalorder %s3262_s29, %s3262_s29 }
  0x24   : > { %p3265_p10 = pnand %p3263_p9, %p3251_p13  ;;  %p3272_p4 = por %p3271_p6, %p3270_p2 }
  0x26   : > { %p3266_p1 = pneg %p3265_p10 }
  0x28   : > { %p3273_p8 = pnand %p3272_p4, %p3266_p1 }
  0x2a   : > { %3276 = shalt.err (!%p3273_p8)
}
  0x2b   : > { %s4246_s13 = smov 128   ;;  %s3413_s24 = smov 8  }
  0x2c   : > { %3193 = dma.hbm_to_vmem [thread:$0]  (!%p3533_p11), %s4228_s2, 512, %s3526_s27, [#allocation6], %s4246_s13, %s4246_s13, %s3413_s24  }
  0x2d   : > { %p37_p1 = scmp.eq.s32.totalorder %s36_s12, 0  ;;  %p46_p2 = scmp.ne.s32.totalorder %s3405_s19, %s3401_s18 }
  0x2e   : > { %p47_p4 = scmp.eq.s32.totalorder %s3409_s20, 0  ;;  %p3206_p6 = scmp.lt.s32.totalorder %s3409_s20, 2 }
  0x2f   : > { %s3572_s15 = scalar_select %p37_p1, %s3405_s19, %s39_s30  }
  0x30   : > { %p48_p8 = por %p47_p4, %p46_p2  ;;  %p4255_p10 = scmp.eq.s32.totalorder %s3503_s21, 1 }
  0x31   : > { %s356_s28 = sand.u32 1, %s3405_s19   ;;  %s2401_s22 = sshll.u32 %s3409_s20, 8 }
  0x32   : > { %p3576_p12 = por %p4255_p10, %p46_p2  ;;  %s2266_s26 = sshll.u32 %s356_s28, 4 }
  0x33   : > { %s3585_s29 = scalar_lea.hbm %s4226_s0, %s2401_s22  ;;  %s360_s27 = scalar_lea.vmem [#allocation2], %s2266_s26 }
  0x34   : > { %s367_s30 = sshll.u32 %s360_s27, 4  ;;  %p3587_p11 = pnand %p3206_p6, %p48_p8  ;;  %s3591_s30 = int_to_ptr.vmem [resolvable:$true] %s367_s30 }
  0x35   : > { %s3593_s14 = scalar_lea.sflag [#allocation3], %s356_s28  ;;  %s3277_s13 = scalar_lea.hbm %s3585_s29, 256 }
  0x36   : > { %p3278_p13 = scmp.ne.s32.totalorder %s3585_s29, %s3277_s13  ;;  %p3279_p0 = pneg %p3587_p11 }
  0x37   : > { %s3282_s22 = scalar_lea.hbm %s4226_s0, 512  ;;  %p3283_p7 = scmp.lt.u32.totalorder %s3585_s29, %s4226_s0 }
  0x38   : > { %p3280_p3 = pnand %p3279_p0, %p3278_p13  ;;  %p3284_p9 = scmp.lt.u32.totalorder %s3282_s22, %s3277_s13 }
  0x39   : > { %p3286_p2 = scmp.lt.u32.totalorder %s3277_s13, %s3585_s29 }
  0x3a   : > { %p3281_p5 = pneg %p3280_p3  ;;  %p3285_p1 = por %p3284_p9, %p3283_p7 }
  0x3c   : > { %p3287_p4 = por %p3286_p2, %p3285_p1 }
  0x3e   : > { %p3288_p6 = pnand %p3287_p4, %p3281_p5 }
  0x40   : > { %3291 = shalt.err (!%p3288_p6)
}
  0x41   : > { %s3292_s28 = scalar_lea.vmem %s3591_s30, 256  ;;  %s3414_s11 = smov [#allocation2]  }
  0x42   : > { %p3293_p8 = scmp.ne.s32.totalorder %s3591_s30, %s3292_s28  ;;  %s3297_s17 = sshll.u32 %s3414_s11, 4  ;;  %s3298_s17 = int_to_ptr.vmem [resolvable:$false] %s3297_s17 }
  0x43   : > { %s3299_s26 = scalar_lea.vmem %s3298_s17, 512  ;;  %p3300_p3 = scmp.lt.s32.totalorder %s3591_s30, %s3298_s17 }
  0x44   : > { %p3295_p10 = pnand %p3293_p8, %p3279_p0  ;;  %p3301_p7 = scmp.lt.s32.totalorder %s3299_s26, %s3292_s28 }
  0x46   : > { %p3296_p13 = pneg %p3295_p10  ;;  %p3302_p9 = por %p3301_p7, %p3300_p3 }
  0x48   : > { %p3303_p1 = pnand %p3302_p9, %p3296_p13 }
  0x4a   : > { %3306 = shalt.err (!%p3303_p1)
}
  0x4b   : > { %s4258_s13 = smov 128   ;;  %p4259_p0 = scmp.ne.s32.totalorder %s4252_s25, 0 }
  0x4c   : > { %3197 = dma.hbm_to_vmem [thread:$0]  (!%p3587_p11), %s3585_s29, 256, %s3591_s30, %s3593_s14, %s4258_s13, %s4258_s13, %s3413_s24  }
  0x4d   : > { %385 = sbr.rel (%p4259_p0) target bundleno = 1779 (0x6f3), region = 60  ;;  %s3627_s22 = sand.u32 (!%p4259_p0), 1, %s3401_s18  }
  0x4e   : > { %s2270_s27 = sshll.u32 (!%p4259_p0), %s3627_s22, 4  ;;  %s388_s28 = scalar_lea.sflag (!%p4259_p0), [#allocation3], %s3627_s22 }
  0x4f   : > { %s3633_s12 = scalar_lea.vmem (!%p4259_p0), [#allocation2], %s2270_s27  ;;  %p4260_p5 = scmp.ne.s32.totalorder (!%p4259_p0), %s4249_s23, 0 }
  0x54   : > { %3380 = dma.done.wait (%p4260_p5), %s388_s28, 256  }
  0x55   : > { %3382 = vsyncadd (%p4260_p5), %s388_s28, 4294967040  ;;  %p4261_p11 = scmp.eq.s32.totalorder %s3503_s21, 0 }
  0x57   : > { %3384 = dma.done.wait (%p4261_p11), [#allocation6], 512   ;;  %p4262_p2 = pmov %p4261_p11 }
  0x58   : > { %v3415_v0 = vmov 0.0|0.0   ;;  %vm3416_vm0 = vmmov 0   ;;  %v3417_v1 = vmov 0.0   ;;  %p442_p4 = scmp.lt.s32.totalorder %s3503_s21, 1  ;;  %v448_v2 = vld [vmem:[#allocation5] sm:$0xff]  ;;  %v449_v3 = vld [vmem:[#allocation5 + $0x8] sm:$0xff]  ;;  %v527_v9 = vlaneseq }
  0x59   : > { %3386 = vsyncadd (%p4262_p2), [#allocation6], 4294966784  ;;  %2917 = vmatprep.subr.bf16.mxu0 %v3415_v0  ;;  %2584 = vmatprep.mubr.msk.f32.mxu0 %vm3416_vm0, %v3417_v1  ;;  %v450_v4 = vld [vmem:[#allocation5 + $0x10] sm:$0xff]  ;;  %v2918_v5 = vpack.c.bf16 %v449_v3, %v448_v2  ;;  %v451_v6 = vld [vmem:[#allocation5 + $0x18] sm:$0xff]  ;;  %vm453_vm1 = vcmask 261120   ;;  %vm562_vm3 = vcmask 130048  }
  0x5a   : > { %s443_s23 = scalar_select %p442_p4, %s3503_s21, 1  ;;  %v2921_v7 = vpack.c.bf16 %v451_v6, %v450_v4  ;;  %v3652_v10 = vshrl.u32 %v527_v9, 7  ;;  %v3654_v11 = vand.u32 127, %v527_v9  ;;  %v452_v18 = vld [vmem:[%s4229_s3] sm:$0x1]  ;;  %v446_v25 = vld [vmem:[%s3633_s12 + $0x8] sm:$0xff] }
  0x5b   : > { %2919 = vmatpush3.bf16.msra.mxu0 %v2918_v5  ;;  %v445_v24 = vld [vmem:[%s3633_s12] sm:$0xff]  ;;  %v2290_v33 = vld [vmem:[%s4230_s4 + $0x48] sm:$0xff]  ;;  %v2292_v39 = vld [vmem:[%s4230_s4 + $0x58] sm:$0xff]  ;;  %vm742_vm9 = vcmask 523264   ;;  %s3950_s28 = scalar_lea.vmem [#allocation7], %s2270_s27  ;;  %s2402_s12 = sshll.u32 %s3503_s21, 8 }
  0x5c   : > { %2920 = vmatprep.subr.bf16.mxu0 %v3415_v0  ;;  %s444_s29 = scalar_lea.vmem %s4227_s1, %s443_s23  ;;  %v2275_v12 = vadd.s32 4294967295, %v3652_v10  ;;  %v552_v14 = vadd.s32 2, %v3652_v10  ;;  %v535_v17 = vadd.s32 8, %v3652_v10  ;;  %v529_v19 = vsub.s32 0, %v3652_v10  ;;  %v2289_v32 = vld [vmem:[%s4230_s4 + $0x40] sm:$0xff]  ;;  %v2291_v38 = vld [vmem:[%s4230_s4 + $0x50] sm:$0xff]  ;;  %s4147_s24 = scalar_lea.hbm %s4236_s10, %s2402_s12 }
  0x5d   : > { %v447_v8 = vld [vmem:[%s444_s29] sm:$0x1]  ;;  %vm546_vm7 = vcmp.eq.s32.totalorder %v3654_v11, %v3652_v10  ;;  %v2931_v37 = vpack.c.bf16 %v2290_v33, %v2289_v32  ;;  %v2935_v41 = vpack.c.bf16 %v2292_v39, %v2291_v38  ;;  %v2294_v43 = vld [vmem:[%s4230_s4 + $0x68] sm:$0xff]  ;;  %v2295_v45 = vld [vmem:[%s4230_s4 + $0x70] sm:$0xff]  ;;  %s2125_s27 = sshll.u32 %s3950_s28, 4  ;;  %s2107_s29 = scalar_lea.sflag [#allocation4], %s3627_s22  ;;  %s4141_s27 = int_to_ptr.vmem [resolvable:$true] %s2125_s27 }
  0x5e   : > { %vm540_vm2 = vcmp.eq.s32.totalorder %v3654_v11, %v2275_v12  ;;  %v2281_v15 = vadd.s32 4294967295, %v552_v14  ;;  %v553_v20 = vadd.s32 2, %v535_v17  ;;  %v2276_v27 = vadd.s32 4294967295, %v535_v17  ;;  %v2293_v42 = vld [vmem:[%s4230_s4 + $0x60] sm:$0xff]  ;;  %v2296_v46 = vld [vmem:[%s4230_s4 + $0x78] sm:$0xff]  ;;  %v645_v49 = vld [vmem:[%s4230_s4 + $0x8] sm:$0xff] }
  0x5f   : > { %2922 = vmatpush3.bf16.msra.mxu0 %v2921_v7  ;;  %v2277_v13 = vsel %vm540_vm2, 1.0, %v3417_v1  ;;  %v3691_v36 = vsel %vm546_vm7, 1.0, %v3417_v1  ;;  %vm547_vm8 = vcmp.eq.s32.totalorder %v3654_v11, %v535_v17  ;;  %v2939_v44 = vpack.c.bf16 %v2294_v43, %v2293_v42  ;;  %v644_v48 = vld [vmem:[%s4230_s4] sm:$0xff]  ;;  %v646_v55 = vld [vmem:[%s4230_s4 + $0x10] sm:$0xff]  ;;  %v647_v56 = vld [vmem:[%s4230_s4 + $0x18] sm:$0xff]  ;;  %s3307_s30 = scalar_lea.vmem %s4141_s27, 256 }
  0x60   : > { %vm556_vm4 = vcmp.eq.s32.totalorder %v3654_v11, %v2281_v15  ;;  %v2282_v28 = vadd.s32 4294967295, %v553_v20  ;;  %vm541_vm5 = vcmp.eq.s32.totalorder %v3654_v11, %v2276_v27  ;;  %v3707_v40 = vsel %vm547_vm8, 1.0, %v3417_v1  ;;  %v648_v60 = vld [vmem:[%s4230_s4 + $0x20] sm:$0xff]  ;;  %v649_v61 = vld [vmem:[%s4230_s4 + $0x28] sm:$0xff]  ;;  %v650_v63 = vld [vmem:[%s4230_s4 + $0x30] sm:$0xff]  ;;  %p3308_p6 = scmp.ne.s32.totalorder %s4141_s27, %s3307_s30  ;;  %s3418_s14 = smov [#allocation7]  }
  0x61   : > { %v3663_v16 = vsel %vm556_vm4, 1.0, %v3417_v1  ;;  %v3685_v34 = vsel %vm541_vm5, 1.0, %v3417_v1  ;;  %v2943_v47 = vpack.c.bf16 %v2296_v46, %v2295_v45  ;;  %v2947_v50 = vpack.c.bf16 %v645_v49, %v644_v48  ;;  %v651_v2 = vld [vmem:[%s4230_s4 + $0x38] sm:$0xff]  ;;  %v2303_v4 = vld [vmem:[%s4230_s4 + $0x80] sm:$0xff]  ;;  %v2304_v5 = vld [vmem:[%s4230_s4 + $0x88] sm:$0xff]  ;;  %s3311_s11 = sshll.u32 %s3418_s14, 4  ;;  %s3312_s11 = int_to_ptr.vmem [resolvable:$false] %s3311_s11 }
  0x62   : > { %2585 = vmatmul.mubr.msk.f32.vlgmr.msra.gmra.mrb[0].mxu0 %vm453_vm1, %v447_v8  ;;  %2643 = vmatprep.mubr.msk.f32.mxu1 %vm562_vm3, %v3663_v16  ;;  %vm557_vm6 = vcmp.eq.s32.totalorder %v3654_v11, %v2282_v28  ;;  %v2951_v59 = vpack.c.bf16 %v647_v56, %v646_v55  ;;  %v2955_v62 = vpack.c.bf16 %v649_v61, %v648_v60  ;;  %v2305_v7 = vld [vmem:[%s4230_s4 + $0x90] sm:$0xff]  ;;  %v2306_v8 = vld [vmem:[%s4230_s4 + $0x98] sm:$0xff]  ;;  %v2307_v12 = vld [vmem:[%s4230_s4 + $0xa0] sm:$0xff]  ;;  %p3309_p8 = pnand %p3308_p6, %p3576_p12  ;;  %p3314_p13 = scmp.lt.s32.totalorder %s4141_s27, %s3312_s11 }
  0x63   : > { %2591 = vmatprep.mubr.msk.f32.mxu0 %vm562_vm3, %v2277_v13  ;;  %v3688_v35 = vsel %vm557_vm6, 1.0, %v3417_v1  ;;  %v2959_v3 = vpack.c.bf16 %v651_v2, %v650_v63  ;;  %v2967_v6 = vpack.c.bf16 %v2304_v5, %v2303_v4  ;;  %v2971_v9 = vpack.c.bf16 %v2306_v8, %v2305_v7  ;;  %v2309_v15 = vld [vmem:[%s4230_s4 + $0xb0] sm:$0xff]  ;;  %v2310_v17 = vld [vmem:[%s4230_s4 + $0xb8] sm:$0xff]  ;;  %v2318_v27 = vld [vmem:[%s4232_s6 + $0x80] sm:$0xff] }
  0x64   : > { %v2319_v28 = vld [vmem:[%s4232_s6 + $0x88] sm:$0xff]  ;;  %v2322_v32 = vld [vmem:[%s4232_s6 + $0xa0] sm:$0xff]  ;;  %v2329_v42 = vld [vmem:[%s4232_s6 + $0xd8] sm:$0xff]  ;;  %p3310_p10 = pneg %p3309_p8 }
  0x65   : > { %v2323_v33 = vld [vmem:[%s4232_s6 + $0xa8] sm:$0xff]  ;;  %v2326_v38 = vld [vmem:[%s4232_s6 + $0xc0] sm:$0xff]  ;;  %v2333_v48 = vld [vmem:[%s4232_s6 + $0xf8] sm:$0xff] }
  0x66   : > { %v2327_v39 = vld [vmem:[%s4232_s6 + $0xc8] sm:$0xff]  ;;  %v1171_v4 = vld [vmem:[%s4232_s6 + $0x38] sm:$0xff] }
  0x67   : > { %v2331_v45 = vld [vmem:[%s4232_s6 + $0xe8] sm:$0xff] }
  0x68   : > { %v1169_v63 = vld [vmem:[%s4232_s6 + $0x28] sm:$0xff] }
  0x69   : > { %v1173_v7 = vld [vmem:[%s4232_s6 + $0x48] sm:$0xff] }
 0x135   : > { %v523_v21 = vpop.f32.mrb[0].mxu0 }
 0x136   : > { %v524_v22 = vadd.f32 %v523_v21, %v452_v18  ;;  %v2586_v23 = vpop.f32.mrb[1].mxu0  ;;  %v2979_v18 = vpack.c.bf16 %v2310_v17, %v2309_v15  ;;  %v1177_v15 = vld [vmem:[%s4232_s6 + $0x68] sm:$0xff] }
 0x138   : > { %v530_v26 = vrot.slane %v524_v22, %v529_v19  ;;  %v2313_v19 = vld [vmem:[%s4231_s5] ss:$0 sm:$0xff] }
 0x13a   : > { %v531_v29 = vadd.f32 %v530_v26, %v445_v24  ;;  %v532_v30 = vadd.f32 %v530_v26, %v446_v25 }
 0x13c   : > { %v2923_v31 = vpack.c.bf16 %v532_v30, %v531_v29  ;;  %v2320_v29 = vld [vmem:[%s4232_s6 + $0x90] sm:$0xff]  ;;  %v2321_v30 = vld [vmem:[%s4232_s6 + $0x98] sm:$0xff] }
 0x13e   : > { %2924 = vmatprep.subr.bf16.mxu0 %v2923_v31  ;;  %2964 = vmatprep.subr.bf16.mxu1 %v2923_v31 }
 0x13f   : > { %2926 = vmatpush3.bf16.msra.mxu0 %v2923_v31  ;;  %2966 = vmatpush3.bf16.msra.mxu1 %v2923_v31 }
 0x140   : > { %2928 = vmatprep.subr.bf16.mxu0 %v2923_v31 }
 0x142   : > { %2592 = vmatmul.mubr.msk.f32.vlgmr.msra.gmra.mrb[2].mxu0 %vm562_vm3, %v3685_v34  ;;  %2644 = vmatmul.mubr.msk.f32.vlgmr.msra.gmra.mrb[0].mxu1 %vm562_vm3, %v3688_v35 }
 0x143   : > { %2930 = vmatpush3.bf16.msra.mxu0 %v2923_v31  ;;  %2598 = vmatprep.mubr.msk.f32.mxu0 %vm562_vm3, %v3691_v36  ;;  %v2995_v31 = vpack.c.bf16 %v2321_v30, %v2320_v29  ;;  %v2342_v29 = vld [vmem:[%s4232_s6 + $0x130] sm:$0xff]  ;;  %v2343_v30 = vld [vmem:[%s4232_s6 + $0x138] sm:$0xff] }
 0x144   : > { %2932 = vmatprep.subr.bf16.mxu0 %v2931_v37  ;;  %2669 = vmatprep.mubr.msk.f32.mxu1 %vm562_vm3, %v2277_v13  ;;  %v2308_v13 = vld [vmem:[%s4230_s4 + $0xa8] sm:$0xff] }
 0x145   : > { %v2975_v14 = vpack.c.bf16 %v2308_v13, %v2307_v12  ;;  %v1175_v12 = vld [vmem:[%s4232_s6 + $0x58] sm:$0xff] }
 0x146   : > { %2599 = vmatmul.mubr.msk.f32.vlgmr.msra.gmra.mrb[4].mxu0 %vm562_vm3, %v3707_v40 }
 0x147   : > { %2934 = vmatpush3.bf16.msra.mxu0 %v2931_v37 }
 0x148   : > { %2936 = vmatprep.subr.bf16.mxu0 %v2935_v41 }
 0x14b   : > { %2938 = vmatpush3.bf16.msra.mxu0 %v2935_v41  ;;  %v2328_v41 = vld [vmem:[%s4232_s6 + $0xd0] sm:$0xff] }
 0x14c   : > { %2940 = vmatprep.subr.bf16.mxu0 %v2939_v44  ;;  %v3011_v43 = vpack.c.bf16 %v2329_v42, %v2328_v41  ;;  %v2350_v41 = vld [vmem:[%s4232_s6 + $0x170] sm:$0xff]  ;;  %v2351_v42 = vld [vmem:[%s4232_s6 + $0x178] sm:$0xff] }
 0x14f   : > { %2942 = vmatpush3.bf16.msra.mxu0 %v2939_v44  ;;  %v2330_v44 = vld [vmem:[%s4232_s6 + $0xe0] sm:$0xff] }
 0x150   : > { %2944 = vmatprep.subr.bf16.mxu0 %v2943_v47  ;;  %v3015_v46 = vpack.c.bf16 %v2331_v45, %v2330_v44  ;;  %v1604_v44 = vmul.u32 2, %v3652_v10 }
 0x152   : > { %v1931_v45 = vadd.s32 2, %v1604_v44  ;;  %vm1698_vm12 = vcmp.eq.s32.totalorder %v3654_v11, %v1604_v44 }
 0x153   : > { %2946 = vmatpush3.bf16.msra.mxu0 %v2943_v47  ;;  %v2332_v47 = vld [vmem:[%s4232_s6 + $0xf0] sm:$0xff] }
 0x154   : > { %2948 = vmatprep.subr.bf16.mxu0 %v2947_v50  ;;  %v3019_v49 = vpack.c.bf16 %v2333_v48, %v2332_v47 }
 0x215   : > { %v2593_v51 = vpop.f32.mrb[2].mxu0  ;;  %v2645_v52 = vpop.f32.mrb[0].mxu1 }
 0x216   : > { %v635_v53 = vpop.f32.mrb[3].mxu0  ;;  %v977_v54 = vpop.f32.mrb[1].mxu1 }
 0x219   : > { %v2600_v57 = vpop.f32.mrb[4].mxu0 }
 0x21a   : > { %v724_v58 = vpop.f32.mrb[5].mxu0 }
 0x21b   : > { %2617 = vmatprep.mubr.msk.f32.mxu0 %vm742_vm9, %v724_v58  ;;  %v1167_v58 = vld [vmem:[%s4232_s6 + $0x18] sm:$0xff] }
 0x21c   : > { %2618 = vmatmul.mubr.msk.f32.vlgmr.msra.gmra.mrb[6].mxu0 %vm742_vm9, %v2600_v57  ;;  %v1166_v57 = vld [vmem:[%s4232_s6 + $0x10] sm:$0xff] }
 0x21d   : > { %2950 = vmatpush3.bf16.msra.mxu0 %v2947_v50  ;;  %2636 = vmatprep.mubr.msk.f32.mxu0 %vm742_vm9, %v635_v53  ;;  %v1164_v50 = vld [vmem:[%s4232_s6] sm:$0xff]  ;;  %v3027_v61 = vpack.c.bf16 %v1167_v58, %v1166_v57  ;;  %v2359_v58 = vld [vmem:[%s4234_s8 + $0x88] sm:$0xff] }
 0x21e   : > { %2952 = vmatprep.subr.bf16.mxu0 %v2951_v59  ;;  %v2358_v57 = vld [vmem:[%s4234_s8 + $0x80] sm:$0xff] }
 0x221   : > { %2954 = vmatpush3.bf16.msra.mxu0 %v2951_v59 }
 0x222   : > { %2956 = vmatprep.subr.bf16.mxu0 %v2955_v62 }
 0x225   : > { %2958 = vmatpush3.bf16.msra.mxu0 %v2955_v62  ;;  %v1168_v62 = vld [vmem:[%s4232_s6 + $0x20] sm:$0xff] }
 0x226   : > { %2960 = vmatprep.subr.bf16.mxu0 %v2959_v3  ;;  %v3031_v2 = vpack.c.bf16 %v1169_v63, %v1168_v62  ;;  %v2362_v63 = vld [vmem:[%s4234_s8 + $0xa0] sm:$0xff] }
 0x229   : > { %2962 = vmatpush3.bf16.msra.mxu0 %v2959_v3  ;;  %v1170_v3 = vld [vmem:[%s4232_s6 + $0x30] sm:$0xff] }
 0x22a   : > { %2968 = vmatprep.subr.bf16.mxu0 %v2967_v6  ;;  %v3035_v5 = vpack.c.bf16 %v1171_v4, %v1170_v3  ;;  %v2364_v4 = vld [vmem:[%s4234_s8 + $0xb0] sm:$0xff] }
 0x22c   : > { %2637 = vmatmul.mubr.msk.f32.vlgmr.msra.gmra.mrb[6].mxu0 %vm742_vm9, %v2593_v51  ;;  %v1165_v51 = vld [vmem:[%s4232_s6 + $0x8] sm:$0xff] }
 0x22d   : > { %2970 = vmatpush3.bf16.msra.mxu0 %v2967_v6  ;;  %2662 = vmatprep.mubr.msk.f32.mxu0 %vm742_vm9, %v977_v54  ;;  %v1172_v6 = vld [vmem:[%s4232_s6 + $0x40] sm:$0xff] }
 0x22e   : > { %2972 = vmatprep.subr.bf16.mxu0 %v2971_v9  ;;  %v3039_v8 = vpack.c.bf16 %v1173_v7, %v1172_v6  ;;  %v2366_v7 = vld [vmem:[%s4234_s8 + $0xc0] sm:$0xff] }
 0x231   : > { %2974 = vmatpush3.bf16.msra.mxu0 %v2971_v9  ;;  %v1174_v9 = vld [vmem:[%s4232_s6 + $0x50] sm:$0xff] }
 0x232   : > { %2976 = vmatprep.subr.bf16.mxu0 %v2975_v14  ;;  %v3043_v13 = vpack.c.bf16 %v1175_v12, %v1174_v9  ;;  %v2368_v12 = vld [vmem:[%s4234_s8 + $0xd0] sm:$0xff] }
 0x235   : > { %2978 = vmatpush3.bf16.msra.mxu0 %v2975_v14  ;;  %v1176_v14 = vld [vmem:[%s4232_s6 + $0x60] sm:$0xff] }
 0x236   : > { %2980 = vmatprep.subr.bf16.mxu0 %v2979_v18  ;;  %v3047_v17 = vpack.c.bf16 %v1177_v15, %v1176_v14  ;;  %v2370_v15 = vld [vmem:[%s4234_s8 + $0xe0] sm:$0xff] }
 0x239   : > { %2982 = vmatpush3.bf16.msra.mxu0 %v2979_v18  ;;  %v1178_v18 = vld [vmem:[%s4232_s6 + $0x70] sm:$0xff] }
 0x23c   : > { %2663 = vmatmul.mubr.msk.f32.vlgmr.msra.gmra.mrb[6].mxu0 %vm742_vm9, %v2645_v52  ;;  %v3023_v52 = vpack.c.bf16 %v1165_v51, %v1164_v50  ;;  %v2353_v50 = vadd.s32 4294967295, %v1604_v44  ;;  %v2374_v51 = vadd.s32 4294967295, %v1931_v45  ;;  %v1682_v45 = vld [vmem:[%s4234_s8] sm:$0xff] }
 0x23d   : > { %2753 = vmatprep.mubr.msk.f32.mxu0 %vm562_vm3, %v3663_v16  ;;  %v2991_v16 = vpack.c.bf16 %v2319_v28, %v2318_v27  ;;  %v2340_v27 = vld [vmem:[%s4232_s6 + $0x120] sm:$0xff]  ;;  %v2341_v28 = vld [vmem:[%s4232_s6 + $0x128] sm:$0xff] }
 0x23e   : > { %vm1606_vm10 = vcmp.eq.s32.totalorder %v3654_v11, %v2353_v50  ;;  %vm1933_vm11 = vcmp.eq.s32.totalorder %v3654_v11, %v2374_v51  ;;  %v2356_v11 = vsel %vm1698_vm12, 1.0, %v3417_v1 }
 0x30f   : > { %v2664_v20 = vpop.f32.mrb[6].mxu0 }
 0x310   : > { %v1086_v21 = vadd.f32 %v2664_v20, %v2313_v19  ;;  %v1067_v22 = vpop.f32.mrb[7].mxu0 }
 0x311   : > { %v1085_v23 = vadd.f32 %v2313_v19, %v1067_v22  ;;  %v1179_v19 = vld [vmem:[%s4232_s6 + $0x78] sm:$0xff]  ;;  %v2337_v22 = vld [vmem:[%s4232_s6 + $0x108] sm:$0xff] }
 0x312   : > { %v1088_v24 = vmax.f32 %v1086_v21, 0.0  ;;  %v3051_v20 = vpack.c.bf16 %v1179_v19, %v1178_v18  ;;  %v2336_v21 = vld [vmem:[%s4232_s6 + $0x100] sm:$0xff]  ;;  %v2372_v19 = vld [vmem:[%s4234_s8 + $0xf0] sm:$0xff] }
 0x313   : > { %v1087_v25 = vmax.f32 %v1085_v23, 0.0  ;;  %v3059_v23 = vpack.c.bf16 %v2337_v22, %v2336_v21  ;;  %v2377_v22 = vld [vmem:[%s4234_s8 + $0x100] sm:$0xff] }
 0x315   : > { %v2983_v26 = vpack.c.bf16 %v1088_v24, %v1087_v25  ;;  %v2338_v24 = vld [vmem:[%s4232_s6 + $0x110] sm:$0xff]  ;;  %v2339_v25 = vld [vmem:[%s4232_s6 + $0x118] sm:$0xff] }
 0x317   : > { %2984 = vmatprep.subr.bf16.mxu1 %v2983_v26  ;;  %3056 = vmatprep.subr.bf16.mxu0 %v2983_v26 }
 0x318   : > { %2986 = vmatpush3.bf16.msra.mxu1 %v2983_v26  ;;  %3058 = vmatpush3.bf16.msra.mxu0 %v2983_v26 }
 0x319   : > { %2988 = vmatprep.subr.bf16.mxu1 %v2983_v26  ;;  %3091 = vmatprep.subr.bf16.mxu0 %v3415_v0 }
 0x31b   : > { %2670 = vmatmul.mubr.msk.f32.vlgmr.msra.gmra.mrb[2].mxu1 %vm562_vm3, %v3685_v34  ;;  %2754 = vmatmul.mubr.msk.f32.vlgmr.msra.gmra.mrb[8].mxu0 %vm562_vm3, %v3688_v35  ;;  %v2999_v34 = vpack.c.bf16 %v2323_v33, %v2322_v32  ;;  %v2324_v35 = vld [vmem:[%s4232_s6 + $0xb0] sm:$0xff]  ;;  %v2344_v32 = vld [vmem:[%s4232_s6 + $0x140] sm:$0xff]  ;;  %v2345_v33 = vld [vmem:[%s4232_s6 + $0x148] sm:$0xff] }
 0x31c   : > { %2990 = vmatpush3.bf16.msra.mxu1 %v2983_v26  ;;  %2676 = vmatprep.mubr.msk.f32.mxu1 %vm562_vm3, %v3691_v36  ;;  %v2325_v36 = vld [vmem:[%s4232_s6 + $0xb8] sm:$0xff]  ;;  %v3063_v26 = vpack.c.bf16 %v2339_v25, %v2338_v24  ;;  %v2379_v25 = vld [vmem:[%s4234_s8 + $0x110] sm:$0xff] }
 0x31d   : > { %2992 = vmatprep.subr.bf16.mxu1 %v2991_v16  ;;  %2795 = vmatprep.mubr.msk.f32.mxu0 %vm3416_vm0, %v3417_v1  ;;  %v3003_v37 = vpack.c.bf16 %v2325_v36, %v2324_v35  ;;  %v2346_v35 = vld [vmem:[%s4232_s6 + $0x150] sm:$0xff]  ;;  %v2347_v36 = vld [vmem:[%s4232_s6 + $0x158] sm:$0xff] }
 0x31f   : > { %2677 = vmatmul.mubr.msk.f32.vlgmr.msra.gmra.mrb[4].mxu1 %vm562_vm3, %v3707_v40  ;;  %v3007_v40 = vpack.c.bf16 %v2327_v39, %v2326_v38  ;;  %v2348_v38 = vld [vmem:[%s4232_s6 + $0x160] sm:$0xff]  ;;  %v2349_v39 = vld [vmem:[%s4232_s6 + $0x168] sm:$0xff] }
 0x320   : > { %2994 = vmatpush3.bf16.msra.mxu1 %v2991_v16  ;;  %v3067_v16 = vpack.c.bf16 %v2341_v28, %v2340_v27  ;;  %v2381_v28 = vld [vmem:[%s4234_s8 + $0x120] sm:$0xff] }
 0x321   : > { %2996 = vmatprep.subr.bf16.mxu1 %v2995_v31 }
 0x324   : > { %2998 = vmatpush3.bf16.msra.mxu1 %v2995_v31  ;;  %v3071_v31 = vpack.c.bf16 %v2343_v30, %v2342_v29  ;;  %v2383_v30 = vld [vmem:[%s4234_s8 + $0x130] sm:$0xff] }
 0x325   : > { %3000 = vmatprep.subr.bf16.mxu1 %v2999_v34 }
 0x328   : > { %3002 = vmatpush3.bf16.msra.mxu1 %v2999_v34  ;;  %v3075_v34 = vpack.c.bf16 %v2345_v33, %v2344_v32  ;;  %v2385_v33 = vld [vmem:[%s4234_s8 + $0x140] sm:$0xff] }
 0x329   : > { %3004 = vmatprep.subr.bf16.mxu1 %v3003_v37 }
 0x32c   : > { %3006 = vmatpush3.bf16.msra.mxu1 %v3003_v37  ;;  %v3079_v37 = vpack.c.bf16 %v2347_v36, %v2346_v35  ;;  %v2387_v36 = vld [vmem:[%s4234_s8 + $0x150] sm:$0xff] }
 0x32d   : > { %3008 = vmatprep.subr.bf16.mxu1 %v3007_v40 }
 0x330   : > { %3010 = vmatpush3.bf16.msra.mxu1 %v3007_v40  ;;  %v3083_v40 = vpack.c.bf16 %v2349_v39, %v2348_v38  ;;  %v2389_v39 = vld [vmem:[%s4234_s8 + $0x160] sm:$0xff] }
 0x331   : > { %3012 = vmatprep.subr.bf16.mxu1 %v3011_v43 }
 0x334   : > { %3014 = vmatpush3.bf16.msra.mxu1 %v3011_v43  ;;  %v3087_v43 = vpack.c.bf16 %v2351_v42, %v2350_v41  ;;  %v2391_v42 = vld [vmem:[%s4234_s8 + $0x170] sm:$0xff] }
 0x335   : > { %3016 = vmatprep.subr.bf16.mxu1 %v3015_v46 }
 0x338   : > { %3018 = vmatpush3.bf16.msra.mxu1 %v3015_v46  ;;  %v2352_v46 = vld [vmem:[%s4233_s7] ss:$0 sm:$0xff] }
 0x339   : > { %3020 = vmatprep.subr.bf16.mxu1 %v3019_v49 }
 0x33c   : > { %3022 = vmatpush3.bf16.msra.mxu1 %v3019_v49 }
 0x33d   : > { %3024 = vmatprep.subr.bf16.mxu1 %v3023_v52 }
 0x3ee   : > { %v2671_v53 = vpop.f32.mrb[2].mxu1  ;;  %v3848_v54 = vpop.f32.mrb[8].mxu0 }
 0x3ef   : > { %v1155_v55 = vpop.f32.mrb[3].mxu1  ;;  %v1488_v56 = vpop.f32.mrb[9].mxu0 }
 0x3f2   : > { %v2678_v59 = vpop.f32.mrb[4].mxu1 }
 0x3f3   : > { %v1246_v60 = vpop.f32.mrb[5].mxu1 }
 0x3f4   : > { %2711 = vmatprep.mubr.f32.mxu1 %v1246_v60  ;;  %v2360_v60 = vld [vmem:[%s4234_s8 + $0x90] sm:$0xff] }
 0x3f5   : > { %2712 = vmatmul.mubr.f32.vlgmr.msra.gmra.mrb[6].mxu1 %v2678_v59  ;;  %v3098_v59 = vpack.c.bf16 %v2359_v58, %v2358_v57  ;;  %v1687_v57 = vld [vmem:[%s4234_s8 + $0x28] sm:$0xff] }
 0x3f6   : > { %3026 = vmatpush3.bf16.msra.mxu1 %v3023_v52  ;;  %2746 = vmatprep.mubr.f32.mxu1 %v1155_v55 }
 0x3f7   : > { %3028 = vmatprep.subr.bf16.mxu1 %v3027_v61 }
 0x3fa   : > { %3030 = vmatpush3.bf16.msra.mxu1 %v3027_v61  ;;  %v2361_v61 = vld [vmem:[%s4234_s8 + $0x98] sm:$0xff] }
 0x3fb   : > { %3032 = vmatprep.subr.bf16.mxu1 %v3031_v2  ;;  %v3101_v62 = vpack.c.bf16 %v2361_v61, %v2360_v60  ;;  %v1690_v60 = vld [vmem:[%s4234_s8 + $0x40] sm:$0xff]  ;;  %v1691_v61 = vld [vmem:[%s4234_s8 + $0x48] sm:$0xff] }
 0x3fe   : > { %3034 = vmatpush3.bf16.msra.mxu1 %v3031_v2  ;;  %v2363_v2 = vld [vmem:[%s4234_s8 + $0xa8] sm:$0xff] }
 0x3ff   : > { %3036 = vmatprep.subr.bf16.mxu1 %v3035_v5  ;;  %v3104_v3 = vpack.c.bf16 %v2363_v2, %v2362_v63  ;;  %v1692_v63 = vld [vmem:[%s4234_s8 + $0x50] sm:$0xff]  ;;  %v1693_v2 = vld [vmem:[%s4234_s8 + $0x58] sm:$0xff] }
 0x402   : > { %3038 = vmatpush3.bf16.msra.mxu1 %v3035_v5  ;;  %v2365_v5 = vld [vmem:[%s4234_s8 + $0xb8] sm:$0xff] }
 0x403   : > { %3040 = vmatprep.subr.bf16.mxu1 %v3039_v8  ;;  %v3107_v6 = vpack.c.bf16 %v2365_v5, %v2364_v4  ;;  %v1694_v4 = vld [vmem:[%s4234_s8 + $0x60] sm:$0xff]  ;;  %v1695_v5 = vld [vmem:[%s4234_s8 + $0x68] sm:$0xff] }
 0x406   : > { %3042 = vmatpush3.bf16.msra.mxu1 %v3039_v8  ;;  %v2367_v8 = vld [vmem:[%s4234_s8 + $0xc8] sm:$0xff] }
 0x407   : > { %3044 = vmatprep.subr.bf16.mxu1 %v3043_v13  ;;  %v3110_v9 = vpack.c.bf16 %v2367_v8, %v2366_v7  ;;  %v1696_v7 = vld [vmem:[%s4234_s8 + $0x70] sm:$0xff]  ;;  %v1697_v8 = vld [vmem:[%s4234_s8 + $0x78] sm:$0xff] }
 0x40a   : > { %3046 = vmatpush3.bf16.msra.mxu1 %v3043_v13  ;;  %v2369_v13 = vld [vmem:[%s4234_s8 + $0xd8] sm:$0xff] }
 0x40b   : > { %3048 = vmatprep.subr.bf16.mxu1 %v3047_v17  ;;  %v3113_v14 = vpack.c.bf16 %v2369_v13, %v2368_v12 }
 0x40e   : > { %3050 = vmatpush3.bf16.msra.mxu1 %v3047_v17  ;;  %v2371_v17 = vld [vmem:[%s4234_s8 + $0xe8] sm:$0xff] }
 0x40f   : > { %3052 = vmatprep.subr.bf16.mxu1 %v3051_v20  ;;  %v3116_v18 = vpack.c.bf16 %v2371_v17, %v2370_v15 }
 0x412   : > { %3054 = vmatpush3.bf16.msra.mxu1 %v3051_v20  ;;  %v2373_v20 = vld [vmem:[%s4234_s8 + $0xf8] sm:$0xff] }
 0x413   : > { %3060 = vmatprep.subr.bf16.mxu1 %v3059_v23  ;;  %v3119_v21 = vpack.c.bf16 %v2373_v20, %v2372_v19 }
 0x415   : > { %2747 = vmatmul.mubr.f32.vlgmr.msra.gmra.mrb[6].mxu1 %v2671_v53 }
 0x416   : > { %3062 = vmatpush3.bf16.msra.mxu1 %v3059_v23  ;;  %2788 = vmatprep.mubr.f32.mxu1 %v1488_v56  ;;  %v2375_v56 = vsel %vm1933_vm11, 1.0, %v3417_v1  ;;  %v2378_v23 = vld [vmem:[%s4234_s8 + $0x108] sm:$0xff] }
 0x417   : > { %3064 = vmatprep.subr.bf16.mxu1 %v3063_v26  ;;  %v3149_v24 = vpack.c.bf16 %v2378_v23, %v2377_v22 }
 0x41a   : > { %3066 = vmatpush3.bf16.msra.mxu1 %v3063_v26  ;;  %v2380_v26 = vld [vmem:[%s4234_s8 + $0x118] sm:$0xff] }
 0x41b   : > { %3068 = vmatprep.subr.bf16.mxu1 %v3067_v16  ;;  %v3152_v27 = vpack.c.bf16 %v2380_v26, %v2379_v25 }
 0x41e   : > { %3070 = vmatpush3.bf16.msra.mxu1 %v3067_v16  ;;  %v2382_v16 = vld [vmem:[%s4234_s8 + $0x128] sm:$0xff] }
 0x41f   : > { %3072 = vmatprep.subr.bf16.mxu1 %v3071_v31  ;;  %v3155_v29 = vpack.c.bf16 %v2382_v16, %v2381_v28 }
 0x422   : > { %3074 = vmatpush3.bf16.msra.mxu1 %v3071_v31  ;;  %v2384_v31 = vld [vmem:[%s4234_s8 + $0x138] sm:$0xff] }
 0x423   : > { %3076 = vmatprep.subr.bf16.mxu1 %v3075_v34  ;;  %v3158_v32 = vpack.c.bf16 %v2384_v31, %v2383_v30 }
 0x426   : > { %3078 = vmatpush3.bf16.msra.mxu1 %v3075_v34  ;;  %v2386_v34 = vld [vmem:[%s4234_s8 + $0x148] sm:$0xff] }
 0x427   : > { %3080 = vmatprep.subr.bf16.mxu1 %v3079_v37  ;;  %v3161_v35 = vpack.c.bf16 %v2386_v34, %v2385_v33 }
 0x42a   : > { %3082 = vmatpush3.bf16.msra.mxu1 %v3079_v37  ;;  %v2388_v37 = vld [vmem:[%s4234_s8 + $0x158] sm:$0xff] }
 0x42b   : > { %3084 = vmatprep.subr.bf16.mxu1 %v3083_v40  ;;  %v3164_v38 = vpack.c.bf16 %v2388_v37, %v2387_v36 }
 0x42e   : > { %3086 = vmatpush3.bf16.msra.mxu1 %v3083_v40  ;;  %v2390_v40 = vld [vmem:[%s4234_s8 + $0x168] sm:$0xff] }
 0x42f   : > { %3088 = vmatprep.subr.bf16.mxu1 %v3087_v43  ;;  %v3167_v41 = vpack.c.bf16 %v2390_v40, %v2389_v39 }
 0x432   : > { %3090 = vmatpush3.bf16.msra.mxu1 %v3087_v43  ;;  %v2392_v43 = vld [vmem:[%s4234_s8 + $0x178] sm:$0xff] }
 0x433   : > { %3145 = vmatprep.subr.bf16.mxu1 %v3415_v0  ;;  %v3170_v44 = vpack.c.bf16 %v2392_v43, %v2391_v42 }
 0x435   : > { %2789 = vmatmul.mubr.f32.vlgmr.msra.gmra.mrb[6].mxu1 %v3848_v54  ;;  %v2354_v54 = vsel %vm1606_vm10, 1.0, %v3417_v1 }
 0x436   : > { %2879 = vmatprep.mubr.msk.f32.mxu1 %vm3416_vm0, %v3417_v1 }
 0x508   : > { %v2790_v47 = vpop.f32.mrb[6].mxu1 }
 0x509   : > { %v1599_v48 = vadd.f32 %v2790_v47, %v2352_v46  ;;  %v1580_v49 = vpop.f32.mrb[7].mxu1 }
 0x50a   : > { %v1598_v52 = vadd.f32 %v2352_v46, %v1580_v49  ;;  %v1683_v46 = vld [vmem:[%s4234_s8 + $0x8] sm:$0xff] }
 0x50b   : > { %v1601_v53 = vmax.f32 %v1599_v48, 0.0  ;;  %v3122_v51 = vpack.c.bf16 %v1683_v46, %v1682_v45 }
 0x50c   : > { %v1600_v55 = vmax.f32 %v1598_v52, 0.0  ;;  %v1684_v52 = vld [vmem:[%s4234_s8 + $0x10] sm:$0xff] }
 0x50d   : > { %1603 = vst [vmem:[%s3950_s28 + $0x8] sm:$0xff] %v1601_v53 }
 0x50e   : > { %1602 = vst [vmem:[%s3950_s28] sm:$0xff] %v1600_v55  ;;  %v3092_v10 = vpack.c.bf16 %v1601_v53, %v1600_v55  ;;  %v1685_v53 = vld [vmem:[%s4234_s8 + $0x18] sm:$0xff]  ;;  %s3313_s28 = scalar_lea.vmem %s3312_s11, 512 }
 0x50f   : > { %p3315_p3 = scmp.lt.s32.totalorder %s3313_s28, %s3307_s30 }
 0x510   : > { %3093 = vmatpush3.bf16.msra.mxu0 %v3092_v10  ;;  %3147 = vmatpush3.bf16.msra.mxu1 %v3092_v10 }
 0x511   : > { %3094 = vmatprep.subr.bf16.mxu0 %v3415_v0  ;;  %3148 = vmatprep.subr.bf16.mxu1 %v3415_v0  ;;  %p3316_p7 = por %p3315_p3, %p3314_p13 }
 0x513   : > { %2796 = vmatmul.mubr.msk.f32.vlgmr.msra.gmra.mrb[10].mxu0 %vm562_vm3, %v2354_v54  ;;  %2880 = vmatmul.mubr.msk.f32.vlgmr.msra.gmra.mrb[8].mxu1 %vm562_vm3, %v2375_v56  ;;  %v3125_v54 = vpack.c.bf16 %v1685_v53, %v1684_v52  ;;  %v1686_v56 = vld [vmem:[%s4234_s8 + $0x20] sm:$0xff]  ;;  %p3317_p9 = pnand %p3316_p7, %p3310_p10 }
 0x514   : > { %3096 = vmatpush3.bf16.msra.mxu0 %v3092_v10  ;;  %2802 = vmatprep.mubr.msk.f32.mxu0 %vm3416_vm0, %v3417_v1  ;;  %v3128_v58 = vpack.c.bf16 %v1687_v57, %v1686_v56 }
 0x515   : > { %3097 = vmatprep.subr.bf16.mxu0 %v3415_v0  ;;  %2914 = vmatprep.mubr.msk.f32.mxu1 %vm3416_vm0, %v3417_v1 }
 0x516   : > { %3150 = vmatpush3.bf16.msra.mxu1 %v3149_v24 }
 0x517   : > { %2803 = vmatmul.mubr.msk.f32.vlgmr.msra.gmra.mrb[12].mxu0 %vm562_vm3, %v2356_v11  ;;  %3151 = vmatprep.subr.bf16.mxu1 %v3415_v0  ;;  %v1688_v11 = vld [vmem:[%s4234_s8 + $0x30] sm:$0xff] }
 0x518   : > { %3099 = vmatpush3.bf16.msra.mxu0 %v3098_v59  ;;  %2837 = vmatprep.mubr.msk.f32.mxu0 %vm3416_vm0, %v3417_v1 }
 0x519   : > { %3100 = vmatprep.subr.bf16.mxu0 %v3415_v0 }
 0x51a   : > { %3153 = vmatpush3.bf16.msra.mxu1 %v3152_v27 }
 0x51b   : > { %3154 = vmatprep.subr.bf16.mxu1 %v3415_v0 }
 0x51c   : > { %3102 = vmatpush3.bf16.msra.mxu0 %v3101_v62  ;;  %v3134_v62 = vpack.c.bf16 %v1691_v61, %v1690_v60 }
 0x51d   : > { %3103 = vmatprep.subr.bf16.mxu0 %v3415_v0 }
 0x51e   : > { %3156 = vmatpush3.bf16.msra.mxu1 %v3155_v29 }
 0x51f   : > { %3157 = vmatprep.subr.bf16.mxu1 %v3415_v0 }
 0x520   : > { %3105 = vmatpush3.bf16.msra.mxu0 %v3104_v3  ;;  %v3137_v3 = vpack.c.bf16 %v1693_v2, %v1692_v63 }
 0x521   : > { %3106 = vmatprep.subr.bf16.mxu0 %v3415_v0 }
 0x522   : > { %3159 = vmatpush3.bf16.msra.mxu1 %v3158_v32 }
 0x523   : > { %3160 = vmatprep.subr.bf16.mxu1 %v3415_v0 }
 0x524   : > { %3108 = vmatpush3.bf16.msra.mxu0 %v3107_v6  ;;  %v3140_v6 = vpack.c.bf16 %v1695_v5, %v1694_v4 }
 0x525   : > { %3109 = vmatprep.subr.bf16.mxu0 %v3415_v0 }
 0x526   : > { %3162 = vmatpush3.bf16.msra.mxu1 %v3161_v35 }
 0x527   : > { %3163 = vmatprep.subr.bf16.mxu1 %v3415_v0 }
 0x528   : > { %3111 = vmatpush3.bf16.msra.mxu0 %v3110_v9  ;;  %v3143_v9 = vpack.c.bf16 %v1697_v8, %v1696_v7 }
 0x529   : > { %3112 = vmatprep.subr.bf16.mxu0 %v3415_v0 }
 0x52a   : > { %3165 = vmatpush3.bf16.msra.mxu1 %v3164_v38 }
 0x52b   : > { %3166 = vmatprep.subr.bf16.mxu1 %v3415_v0 }
 0x52c   : > { %3114 = vmatpush3.bf16.msra.mxu0 %v3113_v14 }
 0x52d   : > { %3115 = vmatprep.subr.bf16.mxu0 %v3415_v0 }
 0x52e   : > { %3168 = vmatpush3.bf16.msra.mxu1 %v3167_v41 }
 0x52f   : > { %3169 = vmatprep.subr.bf16.mxu1 %v3415_v0 }
 0x530   : > { %3117 = vmatpush3.bf16.msra.mxu0 %v3116_v18 }
 0x531   : > { %3118 = vmatprep.subr.bf16.mxu0 %v3415_v0 }
 0x532   : > { %3171 = vmatpush3.bf16.msra.mxu1 %v3170_v44 }
 0x534   : > { %3120 = vmatpush3.bf16.msra.mxu0 %v3119_v21 }
 0x535   : > { %3121 = vmatprep.subr.bf16.mxu0 %v3415_v0 }
 0x5e6   : > { %v1678_v47 = vpop.f32.mrb[10].mxu0  ;;  %v2005_v48 = vpop.f32.mrb[8].mxu1 }
 0x5e7   : > { %v2797_v49 = vpop.f32.mrb[11].mxu0  ;;  %v2881_v50 = vpop.f32.mrb[9].mxu1  ;;  %2915 = vmatmul.mubr.f32.vlgmr.msra.gmra.mrb[10].mxu1 %v2005_v48 }
 0x5ea   : > { %v1770_v55 = vpop.f32.mrb[12].mxu0 }
 0x5eb   : > { %v2804_v10 = vpop.f32.mrb[13].mxu0  ;;  %2838 = vmatmul.mubr.f32.vlgmr.msra.gmra.mrb[14].mxu0 %v1770_v55 }
 0x5ec   : > { %3123 = vmatpush3.bf16.msra.mxu0 %v3122_v51  ;;  %2872 = vmatprep.mubr.msk.f32.mxu0 %vm3416_vm0, %v3417_v1  ;;  %v1689_v1 = vld [vmem:[%s4234_s8 + $0x38] sm:$0xff] }
 0x5ed   : > { %3124 = vmatprep.subr.bf16.mxu0 %v3415_v0  ;;  %v3131_v59 = vpack.c.bf16 %v1689_v1, %v1688_v11 }
 0x5f0   : > { %3126 = vmatpush3.bf16.msra.mxu0 %v3125_v54 }
 0x5f1   : > { %3127 = vmatprep.subr.bf16.mxu0 %v3415_v0 }
 0x5f4   : > { %3129 = vmatpush3.bf16.msra.mxu0 %v3128_v58 }
 0x5f5   : > { %3130 = vmatprep.subr.bf16.mxu0 %v3415_v0 }
 0x5f8   : > { %3132 = vmatpush3.bf16.msra.mxu0 %v3131_v59 }
 0x5f9   : > { %3133 = vmatprep.subr.bf16.mxu0 %v3415_v0 }
 0x5fc   : > { %3135 = vmatpush3.bf16.msra.mxu0 %v3134_v62 }
 0x5fd   : > { %3136 = vmatprep.subr.bf16.mxu0 %v3415_v0 }
 0x600   : > { %3138 = vmatpush3.bf16.msra.mxu0 %v3137_v3 }
 0x601   : > { %3139 = vmatprep.subr.bf16.mxu0 %v3415_v0 }
 0x604   : > { %3141 = vmatpush3.bf16.msra.mxu0 %v3140_v6 }
 0x605   : > { %3142 = vmatprep.subr.bf16.mxu0 %v3415_v0 }
 0x608   : > { %3144 = vmatpush3.bf16.msra.mxu0 %v3143_v9 }
 0x60b   : > { %2873 = vmatmul.mubr.f32.vlgmr.msra.gmra.mrb[16].mxu0 %v1678_v47 }
 0x60c   : > { %3320 = shalt.err (!%p3317_p9)
}
 0x60d   : > { %s3321_s17 = scalar_lea.hbm %s4147_s24, 256  ;;  %s3325_s12 = scalar_lea.hbm %s4236_s10, 512 }
 0x60e   : > { %p3322_p1 = scmp.ne.s32.totalorder %s4147_s24, %s3321_s17  ;;  %p3326_p11 = scmp.lt.u32.totalorder %s4147_s24, %s4236_s10 }
 0x60f   : > { %p3327_p2 = scmp.lt.u32.totalorder %s3325_s12, %s3321_s17  ;;  %p3329_p6 = scmp.lt.u32.totalorder %s3321_s17, %s4147_s24 }
 0x610   : > { %p3323_p0 = pnand %p3322_p1, %p3576_p12 }
 0x611   : > { %p3328_p4 = por %p3327_p2, %p3326_p11 }
 0x612   : > { %p3324_p5 = pneg %p3323_p0 }
 0x613   : > { %p3330_p8 = por %p3329_p6, %p3328_p4 }
 0x615   : > { %p3331_p10 = pnand %p3330_p8, %p3324_p5 }
 0x617   : > { %3334 = shalt.err (!%p3331_p10)
}
 0x618   : > { %s3419_s30 = smov 128   ;;  %s3420_s14 = smov 8   ;;  %v2393_v19 = vld [vmem:[%s4235_s9] ss:$0 sm:$0xff] }
 0x619   : > { %3186 = dma.vmem_to_hbm [thread:$0]  (%p3576_p12), %s4141_s27, 256, %s4147_s24, %s2107_s29, %s3419_s30, %s3419_s30, %s3420_s14  }
 0x61a   : > { %s2273_s11 = sshll.u32 %s3627_s22, 3  ;;  %s2398_s26 = sshll.u32 %s3503_s21, 7 }
 0x61b   : > { %s441_s13 = scalar_lea.vmem [#allocation8], %s2273_s11  ;;  %s4263_s29 = sld [smem:[#allocation17_spill]] }
 0x61c   : > { %s2141_s12 = sshll.u32 %s441_s13, 4  ;;  %s2112_s25 = scalar_lea.sflag [#allocation9], %s3627_s22  ;;  %s4183_s12 = int_to_ptr.vmem [resolvable:$true] %s2141_s12 }
 0x61d   : > { %s3335_s30 = scalar_lea.vmem %s4183_s12, 128  ;;  %s3421_s21 = smov [#allocation8]  }
 0x61e   : > { %p3336_p13 = scmp.ne.s32.totalorder %s4183_s12, %s3335_s30  ;;  %s3339_s14 = sshll.u32 %s3421_s21, 4  ;;  %s3340_s14 = int_to_ptr.vmem [resolvable:$false] %s3339_s14 }
 0x61f   : > { %s3341_s11 = scalar_lea.vmem %s3340_s14, 256  ;;  %p3342_p9 = scmp.lt.s32.totalorder %s4183_s12, %s3340_s14 }
 0x620   : > { %p3337_p3 = pnand %p3336_p13, %p3576_p12  ;;  %p3343_p1 = scmp.lt.s32.totalorder %s3341_s11, %s3335_s30 }
 0x621   : > { %s4181_s23 = scalar_lea.hbm %s4263_s29, %s2398_s26 }
 0x622   : > { %p3338_p7 = pneg %p3337_p3  ;;  %p3344_p0 = por %p3343_p1, %p3342_p9 }
 0x624   : > { %p3345_p5 = pnand %p3344_p0, %p3338_p7 }
 0x6ba   : > { %v2092_v0 = vpop.f32.mrb[10].mxu1 }
 0x6bb   : > { %v2916_v12 = vpop.f32.mrb[11].mxu1 }
 0x6be   : > { %v1857_v13 = vpop.f32.mrb[14].mxu0 }
 0x6bf   : > { %v2839_v14 = vpop.f32.mrb[15].mxu0 }
 0x6de   : > { %v1927_v15 = vpop.f32.mrb[16].mxu0 }
 0x6df   : > { %v1928_v17 = vadd.f32 %v1927_v15, %v1857_v13  ;;  %v2874_v18 = vpop.f32.mrb[17].mxu0 }
 0x6e1   : > { %v2096_v20 = vadd.f32 %v2092_v0, %v1928_v17 }
 0x6e3   : > { %v2104_v21 = vadd.f32 %v2393_v19, %v2096_v20 }
 0x6e5   : > { %2105 = vst.msk [vmem:[%s441_s13] sm:$0xff] %vm742_vm9, %v2104_v21 }
 0x6e6   : > { %3348 = shalt.err (!%p3345_p5)
}
 0x6e7   : > { %s3349_s22 = scalar_lea.hbm %s4181_s23, 128  ;;  %s3353_s26 = scalar_lea.hbm %s4263_s29, 256 }
 0x6e8   : > { %p3350_p11 = scmp.ne.s32.totalorder %s4181_s23, %s3349_s22  ;;  %p3354_p6 = scmp.lt.u32.totalorder %s4181_s23, %s4263_s29 }
 0x6e9   : > { %p3355_p8 = scmp.lt.u32.totalorder %s3353_s26, %s3349_s22  ;;  %p3357_p13 = scmp.lt.u32.totalorder %s3349_s22, %s4181_s23 }
 0x6ea   : > { %p3351_p2 = pnand %p3350_p11, %p3576_p12 }
 0x6eb   : > { %p3356_p10 = por %p3355_p8, %p3354_p6 }
 0x6ec   : > { %p3352_p4 = pneg %p3351_p2 }
 0x6ed   : > { %p3358_p3 = por %p3357_p13, %p3356_p10 }
 0x6ef   : > { %p3359_p7 = pnand %p3358_p3, %p3352_p4 }
 0x6f1   : > { %3362 = shalt.err (!%p3359_p7)
}
 0x6f2   : > { %3187 = dma.vmem_to_hbm [thread:$0]  (%p3576_p12), %s4183_s12, 128, %s4181_s23, %s2112_s25  }
 0x6f3 PF: > { %s4264_s24 = sld [smem:[#allocation14_spill]]  ;;  %s4265_s30 = sld [smem:[#allocation15_spill]] }
 0x6f4   : > { %p4267_p1 = scmp.ge.s32.totalorder %s3409_s20, 2 }
 0x6f9   : > { %s2153_s21 = sand.u32 1, %s4264_s24   ;;  %p4266_p9 = scmp.ne.s32.totalorder %s4265_s30, 0 }
 0x6fa   : > { %s2154_s14 = scalar_lea.sflag [#allocation4], %s2153_s21 }
 0x6fb   : > { %p3199_p0 = pnand %p4267_p1, %p4266_p9 }
 0x6fd   : > { %3388 = dma.done.wait (!%p3199_p0), %s2154_s14, 256  }
 0x6fe   : > { %3390 = vsyncadd (!%p3199_p0), %s2154_s14, 4294967040  ;;  %s2163_s11 = scalar_lea.sflag [#allocation9], %s2153_s21 }
 0x6ff   : > { %3392 = dma.done.wait (!%p3199_p0), %s2163_s11, 128  }
 0x700   : > { %3394 = vsyncadd (!%p3199_p0), %s2163_s11, 4294967168  ;;  %s4268_s20 = sld [smem:[#allocation16_spill]]  ;;  %s4269_s17 = smov %s3401_s18 }
 0x701   : > { %s4270_s18 = smov %s3405_s19  ;;  %s4271_s19 = smov %s3572_s15 }
 0x706   : > { %p29_p12 = scmp.ge.s32.totalorder %s4268_s20, 4  }
 0x708   :  { %31 = sbr.rel (!%p29_p12) target bundleno = 10 (0xa), region = 135 }
 0x70f   :  { %2168 = vsyncpa [#allocation3], 1 }
 0x710   :  { %2170 = vsyncpa [#allocation3 + $0x1], 1 }
 0x711   :  { %2171 = vsyncpa [#allocation6], 1 }
 0x712   :  { %2172 = vsyncpa [#allocation4], 1 }
 0x713   :  { %2174 = vsyncpa [#allocation4 + $0x1], 1 }
 0x714   :  { %2175 = vsyncpa [#allocation9], 1 }
 0x715   :  { %2177 = vsyncpa [#allocation9 + $0x1], 1 }

</bundles_post_ra>
